<compile_context>
chip_gen: v7x
topology: tpu7x:2x2x1
jax: 0.10.0
libtpu: 0.0.40
codegen_flags: <defaults>
</compile_context>

<pallas_src>
import functools

import jax
import jax.numpy as jnp
from jax.experimental import pallas as pl
from jax.experimental.pallas import tpu as pltpu


# ---------------------------------------------------------------------------
# Single fused kernel per batch tile:
#   (x - off) -> Linear -> [LSTM -> Linear -> ReLU] x n_blocks -> Linear -> (+ off)
# Row layout inside a tile is time-major: row = t * Bt + b.
# Gate order follows PyTorch: i, f, g, o.  b = b_ih + b_hh (combined outside);
# g-gate columns of w_ih / w_hh / b are pre-scaled by 2 (tanh-from-sigmoid).
# ---------------------------------------------------------------------------
def make_fused_kernel(n_blocks, T, Bt, H):
    def kernel(x_ref, w_in_ref, b_in_ref, w_lstm_ref, b_lstm_ref,
               w_lin_ref, b_lin_ref, w_out_ref, b_out_ref, o_ref):
        x = x_ref[...]                                  # (T*Bt, seq_len)
        offset = x[:, 0:1]                              # per-row x[:, 0][:, None]
        h = x - offset

        # nn.Linear(seq_len, H); nn.Dropout is identity in inference mode.
        h = (jnp.dot(h, w_in_ref[...], preferred_element_type=jnp.float32)
             + b_in_ref[...])

        for bi in range(n_blocks):
            # Unpack this block's weights with static row slices.
            w_ih = w_lstm_ref[2 * H * bi:2 * H * bi + H, :]         # (H, 4H)
            w_hh = w_lstm_ref[2 * H * bi + H:2 * H * (bi + 1), :]   # (H, 4H)
            b    = b_lstm_ref[bi:bi + 1, :]                         # (1, 4H)

            # Input-to-hidden pre-activations for all steps: one matmul.
            gx = (jnp.dot(h, w_ih, preferred_element_type=jnp.float32) + b)

            h_t = jnp.zeros((Bt, H), jnp.float32)       # vreg-resident carries
            c_t = jnp.zeros((Bt, H), jnp.float32)
            h_steps = []                                # vreg-resident h stack

            # Fully unrolled serial recurrence over time (T is small & static).
            for t in range(T):
                g = gx[t * Bt:(t + 1) * Bt, :] + jnp.dot(
                    h_t, w_hh, preferred_element_type=jnp.float32)
                s = jax.nn.sigmoid(g)                   # single 4H-wide EUP op
                i_g = s[:, 0:H]
                f_g = s[:, H:2 * H]
                g_g = 2.0 * s[:, 2 * H:3 * H] - 1.0     # == tanh (cols pre-scaled x2)
                o_g = s[:, 3 * H:4 * H]
                c_t = f_g * c_t + i_g * g_g
                h_t = o_g * jnp.tanh(c_t)
                h_steps.append(h_t)

            hs = jnp.concatenate(h_steps, axis=0)       # (T*Bt, H), time-major

            # Block's Linear + ReLU.
            w_l = w_lin_ref[H * bi:H * (bi + 1), :]
            b_l = b_lin_ref[bi:bi + 1, :]
            h = jnp.maximum(
                jnp.dot(hs, w_l, preferred_element_type=jnp.float32) + b_l, 0.0)

        # nn.Linear(H, out_seq_len), then re-add the per-row offset.
        # (Output last dim = out_seq_len; masked store is negligible at this size.)
        y = (jnp.dot(h, w_out_ref[...], preferred_element_type=jnp.float32)
             + b_out_ref[...])
        o_ref[...] = y + offset

    return kernel


# ---------------------------------------------------------------------------
# Parameter packing: collapse 19 tiny arrays into 8 buffers and pre-scale the
# g-gate columns by 2 for the tanh-from-sigmoid trick.
# ---------------------------------------------------------------------------
def pack_params(p):
    H = p["w_in"].shape[1]
    scale = jnp.ones((4 * H,), jnp.float32).at[2 * H:3 * H].set(2.0)
    w_lstm, b_lstm, w_lin, b_lin = [], [], [], []
    for blk in p["blocks"]:
        w_lstm.append(jnp.concatenate([blk["w_ih"] * scale,
                                       blk["w_hh"] * scale], axis=0))
        b_lstm.append(blk["b"] * scale)
        w_lin.append(blk["w_lin"])
        b_lin.append(blk["b_lin"])
    return {
        "w_in": p["w_in"],
        "b_in": p["b_in"].reshape(1, -1),
        "w_lstm": jnp.concatenate(w_lstm, axis=0),   # (n_blocks*2H, 4H)
        "b_lstm": jnp.stack(b_lstm, axis=0),         # (n_blocks, 4H)
        "w_lin": jnp.concatenate(w_lin, axis=0),     # (n_blocks*H, H)
        "b_lin": jnp.stack(b_lin, axis=0),           # (n_blocks, H)
        "w_out": p["w_out"],
        "b_out": p["b_out"].reshape(1, -1),
    }


# ---------------------------------------------------------------------------
# Wrapper: one pallas_call, grid over batch tiles (parallel -> megacore on v7x).
# x: (B, T, seq_len) — B independent sequences, each == original 2-D forward.
# ---------------------------------------------------------------------------
@functools.partial(jax.jit, static_argnames=("batch_tile",))
def simple_lstm_forward(x, pp, *, batch_tile=4):
    B, T, S = x.shape
    H = pp["w_in"].shape[1]
    OUT = pp["w_out"].shape[1]
    n_blocks = pp["b_lstm"].shape[0]

    Bt = min(batch_tile, B)
    assert B % Bt == 0, "batch must be divisible by batch_tile"
    num_tiles = B // Bt
    TB = T * Bt

    # Time-major layout within each tile: row = t*Bt + b.
    x_tiles = (x.reshape(num_tiles, Bt, T, S)
                .transpose(0, 2, 1, 3)
                .reshape(num_tiles, TB, S))

    kernel = make_fused_kernel(n_blocks, T, Bt, H)
    vmem_whole = pl.BlockSpec(memory_space=pltpu.MemorySpace.VMEM)

    out = pl.pallas_call(
        kernel,
        out_shape=jax.ShapeDtypeStruct((num_tiles, TB, OUT), jnp.float32),
        grid=(num_tiles,),
        in_specs=[pl.BlockSpec((None, TB, S), lambda i: (i, 0, 0))]
                 + [vmem_whole] * 8,
        out_specs=pl.BlockSpec((None, TB, OUT), lambda i: (i, 0, 0)),
        compiler_params=pltpu.CompilerParams(
            dimension_semantics=("parallel",),          # megacore split on v7x
            vmem_limit_bytes=32 * 1024 * 1024),          # safe on v5e/v6e/v7x
    )(x_tiles, pp["w_in"], pp["b_in"], pp["w_lstm"], pp["b_lstm"],
      pp["w_lin"], pp["b_lin"], pp["w_out"], pp["b_out"])

    return (out.reshape(num_tiles, T, Bt, OUT)
               .transpose(0, 2, 1, 3)
               .reshape(B, T, OUT))


# ---------------------------------------------------------------------------
# Deterministic parameter init (PyTorch-style uniform ±1/sqrt(fan_in))
# ---------------------------------------------------------------------------
def init_params(key, seq_len, hidden, out_seq_len, n_blocks=3):
    def uni(k, shape, fan_in):
        bound = 1.0 / (fan_in ** 0.5)
        return jax.random.uniform(k, shape, jnp.float32, -bound, bound)

    keys = iter(jax.random.split(key, 4 + n_blocks * 6))
    params = {
        "w_in": uni(next(keys), (seq_len, hidden), seq_len),
        "b_in": uni(next(keys), (hidden,), seq_len),
        "blocks": [],
        "w_out": uni(next(keys), (hidden, out_seq_len), hidden),
        "b_out": uni(next(keys), (out_seq_len,), hidden),
    }
    for _ in range(n_blocks):
        b_ih = uni(next(keys), (4 * hidden,), hidden)
        b_hh = uni(next(keys), (4 * hidden,), hidden)
        params["blocks"].append({
            "w_ih": uni(next(keys), (hidden, 4 * hidden), hidden),
            "w_hh": uni(next(keys), (hidden, 4 * hidden), hidden),
            "b": b_ih + b_hh,
            "w_lin": uni(next(keys), (hidden, hidden), hidden),
            "b_lin": uni(next(keys), (hidden,), hidden),
        })
    return params


# ---------------------------------------------------------------------------
# Pure-JAX reference (standard LSTM math, un-scaled params) for correctness
# ---------------------------------------------------------------------------
def ref_forward(x, p):
    def one_sequence(xb):                       # xb: (T, seq_len)
        offset = xb[:, 0:1]
        h = xb - offset
        h = h @ p["w_in"] + p["b_in"]
        for blk in p["blocks"]:
            H = blk["w_hh"].shape[0]
            gx = h @ blk["w_ih"] + blk["b"]

            def step(carry, g_t):
                hp, cp = carry
                g = g_t + hp @ blk["w_hh"]
                i_g = jax.nn.sigmoid(g[0:H])
                f_g = jax.nn.sigmoid(g[H:2 * H])
                g_g = jnp.tanh(g[2 * H:3 * H])
                o_g = jax.nn.sigmoid(g[3 * H:4 * H])
                c = f_g * cp + i_g * g_g
                hn = o_g * jnp.tanh(c)
                return (hn, c), hn

            (_, _), hs = jax.lax.scan(step, (jnp.zeros(H), jnp.zeros(H)), gx)
            h = jnp.maximum(hs @ blk["w_lin"] + blk["b_lin"], 0.0)
        y = h @ p["w_out"] + p["b_out"]
        return y + offset

    return jax.vmap(one_sequence)(x)


if __name__ == "__main__":
    # ModelConfig: seq_len=16, out_seq_len=16, hidden_layer_size=32.
    # B=8 independent sequences of T=8 rows each; batch tile = 4 -> grid=(2,).
    B, T, SEQ_LEN, HIDDEN, OUT_SEQ_LEN = 8, 8, 16, 32, 16

    key = jax.random.PRNGKey(0)
    k_x, k_p = jax.random.split(key)
    x = jax.random.normal(k_x, (B, T, SEQ_LEN), jnp.float32)
    params = init_params(k_p, SEQ_LEN, HIDDEN, OUT_SEQ_LEN)
    packed = pack_params(params)

    out = simple_lstm_forward(x, packed, batch_tile=4)
    out = jax.block_until_ready(out)

    ref = ref_forward(x, params)
    assert out.shape == (B, T, OUT_SEQ_LEN)
    assert jnp.allclose(out, ref, atol=2e-4, rtol=2e-4), "mismatch vs JAX reference"

    print("KERNEL_OK")
</pallas_src>

<mosaic_0001>
module attributes {stable_mosaic.version = 11 : i64} {
  func.func @kernel(%arg0: i32, %arg1: memref<1x32x16xf32, #tpu.memory_space<vmem>>, %arg2: memref<16x32xf32, #tpu.memory_space<vmem>>, %arg3: memref<1x32xf32, #tpu.memory_space<vmem>>, %arg4: memref<192x128xf32, #tpu.memory_space<vmem>>, %arg5: memref<3x128xf32, #tpu.memory_space<vmem>>, %arg6: memref<96x32xf32, #tpu.memory_space<vmem>>, %arg7: memref<3x32xf32, #tpu.memory_space<vmem>>, %arg8: memref<32x16xf32, #tpu.memory_space<vmem>>, %arg9: memref<1x16xf32, #tpu.memory_space<vmem>>, %arg10: memref<1x32x16xf32, #tpu.memory_space<vmem>>) attributes {dimension_semantics = [#tpu.dimension_semantics<parallel>], iteration_bounds = array<i64: 2>, scalar_prefetch = 0 : i64, scratch_operands = 0 : i64, tpu.core_type = #tpu.core_type<tc>, window_params = [{transform_indices = @transform_0, window_bounds = array<i64: 1, 32, 16>}, {pipeline_mode = #tpu.pipeline_mode<synchronous>, transform_indices = @transform_1, window_bounds = array<i64: 16, 32>}, {pipeline_mode = #tpu.pipeline_mode<synchronous>, transform_indices = @transform_2, window_bounds = array<i64: 1, 32>}, {pipeline_mode = #tpu.pipeline_mode<synchronous>, transform_indices = @transform_3, window_bounds = array<i64: 192, 128>}, {pipeline_mode = #tpu.pipeline_mode<synchronous>, transform_indices = @transform_4, window_bounds = array<i64: 3, 128>}, {pipeline_mode = #tpu.pipeline_mode<synchronous>, transform_indices = @transform_5, window_bounds = array<i64: 96, 32>}, {pipeline_mode = #tpu.pipeline_mode<synchronous>, transform_indices = @transform_6, window_bounds = array<i64: 3, 32>}, {pipeline_mode = #tpu.pipeline_mode<synchronous>, transform_indices = @transform_7, window_bounds = array<i64: 32, 16>}, {pipeline_mode = #tpu.pipeline_mode<synchronous>, transform_indices = @transform_8, window_bounds = array<i64: 1, 16>}, {transform_indices = @transform_9, window_bounds = array<i64: 1, 32, 16>}]} {
    %c0 = arith.constant 0 : index
    %c0_0 = arith.constant 0 : index
    %c0_1 = arith.constant 0 : index
    %0 = vector.load %arg1[%c0, %c0_0, %c0_1] : memref<1x32x16xf32, #tpu.memory_space<vmem>>, vector<1x32x16xf32>
    %1 = vector.shape_cast %0 : vector<1x32x16xf32> to vector<32x16xf32>
    %2 = vector.extract_strided_slice %1 {offsets = [0, 0], sizes = [32, 1], strides = [1, 1]} : vector<32x16xf32> to vector<32x1xf32>
    %3 = vector.broadcast %2 : vector<32x1xf32> to vector<32x16xf32>
    %4 = arith.subf %1, %3 : vector<32x16xf32>
    %c0_2 = arith.constant 0 : index
    %c0_3 = arith.constant 0 : index
    %5 = vector.load %arg2[%c0_2, %c0_3] : memref<16x32xf32, #tpu.memory_space<vmem>>, vector<16x32xf32>
    %cst = arith.constant dense<0.000000e+00> : vector<32x32xf32>
    %6 = tpu.matmul %4, %5, %cst {dimension_numbers = #tpu.dot_dimension_numbers<[1], [0], [0], [1], [0, 0, 1, 1], [], []>} : vector<32x16xf32>, vector<16x32xf32>, vector<32x32xf32> -> vector<32x32xf32>
    %c0_4 = arith.constant 0 : index
    %c0_5 = arith.constant 0 : index
    %7 = vector.load %arg3[%c0_4, %c0_5] : memref<1x32xf32, #tpu.memory_space<vmem>>, vector<1x32xf32>
    %8 = vector.broadcast %7 : vector<1x32xf32> to vector<32x32xf32>
    %9 = arith.addf %6, %8 : vector<32x32xf32>
    %c0_6 = arith.constant 0 : index
    %c0_7 = arith.constant 0 : index
    %10 = vector.load %arg4[%c0_6, %c0_7] : memref<192x128xf32, #tpu.memory_space<vmem>>, vector<32x128xf32>
    %c32 = arith.constant 32 : index
    %c0_8 = arith.constant 0 : index
    %11 = vector.load %arg4[%c32, %c0_8] : memref<192x128xf32, #tpu.memory_space<vmem>>, vector<32x128xf32>
    %c0_9 = arith.constant 0 : index
    %c0_10 = arith.constant 0 : index
    %12 = vector.load %arg5[%c0_9, %c0_10] : memref<3x128xf32, #tpu.memory_space<vmem>>, vector<1x128xf32>
    %cst_11 = arith.constant dense<0.000000e+00> : vector<32x128xf32>
    %13 = tpu.matmul %9, %10, %cst_11 {dimension_numbers = #tpu.dot_dimension_numbers<[1], [0], [0], [1], [0, 0, 1, 1], [], []>} : vector<32x32xf32>, vector<32x128xf32>, vector<32x128xf32> -> vector<32x128xf32>
    %14 = vector.broadcast %12 : vector<1x128xf32> to vector<32x128xf32>
    %15 = arith.addf %13, %14 : vector<32x128xf32>
    %cst_12 = arith.constant 0.000000e+00 : f32
    %16 = vector.broadcast %cst_12 : f32 to vector<4x32xf32>
    %cst_13 = arith.constant 0.000000e+00 : f32
    %17 = vector.broadcast %cst_13 : f32 to vector<4x32xf32>
    %18 = vector.extract_strided_slice %15 {offsets = [0, 0], sizes = [4, 128], strides = [1, 1]} : vector<32x128xf32> to vector<4x128xf32>
    %cst_14 = arith.constant dense<0.000000e+00> : vector<4x128xf32>
    %19 = tpu.matmul %16, %11, %cst_14 {dimension_numbers = #tpu.dot_dimension_numbers<[1], [0], [0], [1], [0, 0, 1, 1], [], []>} : vector<4x32xf32>, vector<32x128xf32>, vector<4x128xf32> -> vector<4x128xf32>
    %20 = arith.addf %18, %19 : vector<4x128xf32>
    %21 = arith.negf %20 : vector<4x128xf32>
    %22 = math.exp %21 : vector<4x128xf32>
    %cst_15 = arith.constant 1.000000e+00 : f32
    %23 = vector.broadcast %cst_15 : f32 to vector<4x128xf32>
    %24 = arith.addf %23, %22 : vector<4x128xf32>
    %25 = arith.divf %23, %24 : vector<4x128xf32>
    %26 = vector.extract_strided_slice %25 {offsets = [0, 0], sizes = [4, 32], strides = [1, 1]} : vector<4x128xf32> to vector<4x32xf32>
    %27 = vector.extract_strided_slice %25 {offsets = [0, 32], sizes = [4, 32], strides = [1, 1]} : vector<4x128xf32> to vector<4x32xf32>
    %28 = vector.extract_strided_slice %25 {offsets = [0, 64], sizes = [4, 32], strides = [1, 1]} : vector<4x128xf32> to vector<4x32xf32>
    %cst_16 = arith.constant 2.000000e+00 : f32
    %29 = vector.broadcast %cst_16 : f32 to vector<4x32xf32>
    %30 = arith.mulf %29, %28 : vector<4x32xf32>
    %cst_17 = arith.constant 1.000000e+00 : f32
    %31 = vector.broadcast %cst_17 : f32 to vector<4x32xf32>
    %32 = arith.subf %30, %31 : vector<4x32xf32>
    %33 = vector.extract_strided_slice %25 {offsets = [0, 96], sizes = [4, 32], strides = [1, 1]} : vector<4x128xf32> to vector<4x32xf32>
    %34 = arith.mulf %27, %17 : vector<4x32xf32>
    %35 = arith.mulf %26, %32 : vector<4x32xf32>
    %36 = arith.addf %34, %35 : vector<4x32xf32>
    %37 = math.tanh %36 : vector<4x32xf32>
    %38 = arith.mulf %33, %37 : vector<4x32xf32>
    %39 = vector.extract_strided_slice %15 {offsets = [4, 0], sizes = [4, 128], strides = [1, 1]} : vector<32x128xf32> to vector<4x128xf32>
    %cst_18 = arith.constant dense<0.000000e+00> : vector<4x128xf32>
    %40 = tpu.matmul %38, %11, %cst_18 {dimension_numbers = #tpu.dot_dimension_numbers<[1], [0], [0], [1], [0, 0, 1, 1], [], []>} : vector<4x32xf32>, vector<32x128xf32>, vector<4x128xf32> -> vector<4x128xf32>
    %41 = arith.addf %39, %40 : vector<4x128xf32>
    %42 = arith.negf %41 : vector<4x128xf32>
    %43 = math.exp %42 : vector<4x128xf32>
    %cst_19 = arith.constant 1.000000e+00 : f32
    %44 = vector.broadcast %cst_19 : f32 to vector<4x128xf32>
    %45 = arith.addf %44, %43 : vector<4x128xf32>
    %46 = arith.divf %44, %45 : vector<4x128xf32>
    %47 = vector.extract_strided_slice %46 {offsets = [0, 0], sizes = [4, 32], strides = [1, 1]} : vector<4x128xf32> to vector<4x32xf32>
    %48 = vector.extract_strided_slice %46 {offsets = [0, 32], sizes = [4, 32], strides = [1, 1]} : vector<4x128xf32> to vector<4x32xf32>
    %49 = vector.extract_strided_slice %46 {offsets = [0, 64], sizes = [4, 32], strides = [1, 1]} : vector<4x128xf32> to vector<4x32xf32>
    %cst_20 = arith.constant 2.000000e+00 : f32
    %50 = vector.broadcast %cst_20 : f32 to vector<4x32xf32>
    %51 = arith.mulf %50, %49 : vector<4x32xf32>
    %cst_21 = arith.constant 1.000000e+00 : f32
    %52 = vector.broadcast %cst_21 : f32 to vector<4x32xf32>
    %53 = arith.subf %51, %52 : vector<4x32xf32>
    %54 = vector.extract_strided_slice %46 {offsets = [0, 96], sizes = [4, 32], strides = [1, 1]} : vector<4x128xf32> to vector<4x32xf32>
    %55 = arith.mulf %48, %36 : vector<4x32xf32>
    %56 = arith.mulf %47, %53 : vector<4x32xf32>
    %57 = arith.addf %55, %56 : vector<4x32xf32>
    %58 = math.tanh %57 : vector<4x32xf32>
    %59 = arith.mulf %54, %58 : vector<4x32xf32>
    %60 = vector.extract_strided_slice %15 {offsets = [8, 0], sizes = [4, 128], strides = [1, 1]} : vector<32x128xf32> to vector<4x128xf32>
    %cst_22 = arith.constant dense<0.000000e+00> : vector<4x128xf32>
    %61 = tpu.matmul %59, %11, %cst_22 {dimension_numbers = #tpu.dot_dimension_numbers<[1], [0], [0], [1], [0, 0, 1, 1], [], []>} : vector<4x32xf32>, vector<32x128xf32>, vector<4x128xf32> -> vector<4x128xf32>
    %62 = arith.addf %60, %61 : vector<4x128xf32>
    %63 = arith.negf %62 : vector<4x128xf32>
    %64 = math.exp %63 : vector<4x128xf32>
    %cst_23 = arith.constant 1.000000e+00 : f32
    %65 = vector.broadcast %cst_23 : f32 to vector<4x128xf32>
    %66 = arith.addf %65, %64 : vector<4x128xf32>
    %67 = arith.divf %65, %66 : vector<4x128xf32>
    %68 = vector.extract_strided_slice %67 {offsets = [0, 0], sizes = [4, 32], strides = [1, 1]} : vector<4x128xf32> to vector<4x32xf32>
    %69 = vector.extract_strided_slice %67 {offsets = [0, 32], sizes = [4, 32], strides = [1, 1]} : vector<4x128xf32> to vector<4x32xf32>
    %70 = vector.extract_strided_slice %67 {offsets = [0, 64], sizes = [4, 32], strides = [1, 1]} : vector<4x128xf32> to vector<4x32xf32>
    %cst_24 = arith.constant 2.000000e+00 : f32
    %71 = vector.broadcast %cst_24 : f32 to vector<4x32xf32>
    %72 = arith.mulf %71, %70 : vector<4x32xf32>
    %cst_25 = arith.constant 1.000000e+00 : f32
    %73 = vector.broadcast %cst_25 : f32 to vector<4x32xf32>
    %74 = arith.subf %72, %73 : vector<4x32xf32>
    %75 = vector.extract_strided_slice %67 {offsets = [0, 96], sizes = [4, 32], strides = [1, 1]} : vector<4x128xf32> to vector<4x32xf32>
    %76 = arith.mulf %69, %57 : vector<4x32xf32>
    %77 = arith.mulf %68, %74 : vector<4x32xf32>
    %78 = arith.addf %76, %77 : vector<4x32xf32>
    %79 = math.tanh %78 : vector<4x32xf32>
    %80 = arith.mulf %75, %79 : vector<4x32xf32>
    %81 = vector.extract_strided_slice %15 {offsets = [12, 0], sizes = [4, 128], strides = [1, 1]} : vector<32x128xf32> to vector<4x128xf32>
    %cst_26 = arith.constant dense<0.000000e+00> : vector<4x128xf32>
    %82 = tpu.matmul %80, %11, %cst_26 {dimension_numbers = #tpu.dot_dimension_numbers<[1], [0], [0], [1], [0, 0, 1, 1], [], []>} : vector<4x32xf32>, vector<32x128xf32>, vector<4x128xf32> -> vector<4x128xf32>
    %83 = arith.addf %81, %82 : vector<4x128xf32>
    %84 = arith.negf %83 : vector<4x128xf32>
    %85 = math.exp %84 : vector<4x128xf32>
    %cst_27 = arith.constant 1.000000e+00 : f32
    %86 = vector.broadcast %cst_27 : f32 to vector<4x128xf32>
    %87 = arith.addf %86, %85 : vector<4x128xf32>
    %88 = arith.divf %86, %87 : vector<4x128xf32>
    %89 = vector.extract_strided_slice %88 {offsets = [0, 0], sizes = [4, 32], strides = [1, 1]} : vector<4x128xf32> to vector<4x32xf32>
    %90 = vector.extract_strided_slice %88 {offsets = [0, 32], sizes = [4, 32], strides = [1, 1]} : vector<4x128xf32> to vector<4x32xf32>
    %91 = vector.extract_strided_slice %88 {offsets = [0, 64], sizes = [4, 32], strides = [1, 1]} : vector<4x128xf32> to vector<4x32xf32>
    %cst_28 = arith.constant 2.000000e+00 : f32
    %92 = vector.broadcast %cst_28 : f32 to vector<4x32xf32>
    %93 = arith.mulf %92, %91 : vector<4x32xf32>
    %cst_29 = arith.constant 1.000000e+00 : f32
    %94 = vector.broadcast %cst_29 : f32 to vector<4x32xf32>
    %95 = arith.subf %93, %94 : vector<4x32xf32>
    %96 = vector.extract_strided_slice %88 {offsets = [0, 96], sizes = [4, 32], strides = [1, 1]} : vector<4x128xf32> to vector<4x32xf32>
    %97 = arith.mulf %90, %78 : vector<4x32xf32>
    %98 = arith.mulf %89, %95 : vector<4x32xf32>
    %99 = arith.addf %97, %98 : vector<4x32xf32>
    %100 = math.tanh %99 : vector<4x32xf32>
    %101 = arith.mulf %96, %100 : vector<4x32xf32>
    %102 = vector.extract_strided_slice %15 {offsets = [16, 0], sizes = [4, 128], strides = [1, 1]} : vector<32x128xf32> to vector<4x128xf32>
    %cst_30 = arith.constant dense<0.000000e+00> : vector<4x128xf32>
    %103 = tpu.matmul %101, %11, %cst_30 {dimension_numbers = #tpu.dot_dimension_numbers<[1], [0], [0], [1], [0, 0, 1, 1], [], []>} : vector<4x32xf32>, vector<32x128xf32>, vector<4x128xf32> -> vector<4x128xf32>
    %104 = arith.addf %102, %103 : vector<4x128xf32>
    %105 = arith.negf %104 : vector<4x128xf32>
    %106 = math.exp %105 : vector<4x128xf32>
    %cst_31 = arith.constant 1.000000e+00 : f32
    %107 = vector.broadcast %cst_31 : f32 to vector<4x128xf32>
    %108 = arith.addf %107, %106 : vector<4x128xf32>
    %109 = arith.divf %107, %108 : vector<4x128xf32>
    %110 = vector.extract_strided_slice %109 {offsets = [0, 0], sizes = [4, 32], strides = [1, 1]} : vector<4x128xf32> to vector<4x32xf32>
    %111 = vector.extract_strided_slice %109 {offsets = [0, 32], sizes = [4, 32], strides = [1, 1]} : vector<4x128xf32> to vector<4x32xf32>
    %112 = vector.extract_strided_slice %109 {offsets = [0, 64], sizes = [4, 32], strides = [1, 1]} : vector<4x128xf32> to vector<4x32xf32>
    %cst_32 = arith.constant 2.000000e+00 : f32
    %113 = vector.broadcast %cst_32 : f32 to vector<4x32xf32>
    %114 = arith.mulf %113, %112 : vector<4x32xf32>
    %cst_33 = arith.constant 1.000000e+00 : f32
    %115 = vector.broadcast %cst_33 : f32 to vector<4x32xf32>
    %116 = arith.subf %114, %115 : vector<4x32xf32>
    %117 = vector.extract_strided_slice %109 {offsets = [0, 96], sizes = [4, 32], strides = [1, 1]} : vector<4x128xf32> to vector<4x32xf32>
    %118 = arith.mulf %111, %99 : vector<4x32xf32>
    %119 = arith.mulf %110, %116 : vector<4x32xf32>
    %120 = arith.addf %118, %119 : vector<4x32xf32>
    %121 = math.tanh %120 : vector<4x32xf32>
    %122 = arith.mulf %117, %121 : vector<4x32xf32>
    %123 = vector.extract_strided_slice %15 {offsets = [20, 0], sizes = [4, 128], strides = [1, 1]} : vector<32x128xf32> to vector<4x128xf32>
    %cst_34 = arith.constant dense<0.000000e+00> : vector<4x128xf32>
    %124 = tpu.matmul %122, %11, %cst_34 {dimension_numbers = #tpu.dot_dimension_numbers<[1], [0], [0], [1], [0, 0, 1, 1], [], []>} : vector<4x32xf32>, vector<32x128xf32>, vector<4x128xf32> -> vector<4x128xf32>
    %125 = arith.addf %123, %124 : vector<4x128xf32>
    %126 = arith.negf %125 : vector<4x128xf32>
    %127 = math.exp %126 : vector<4x128xf32>
    %cst_35 = arith.constant 1.000000e+00 : f32
    %128 = vector.broadcast %cst_35 : f32 to vector<4x128xf32>
    %129 = arith.addf %128, %127 : vector<4x128xf32>
    %130 = arith.divf %128, %129 : vector<4x128xf32>
    %131 = vector.extract_strided_slice %130 {offsets = [0, 0], sizes = [4, 32], strides = [1, 1]} : vector<4x128xf32> to vector<4x32xf32>
    %132 = vector.extract_strided_slice %130 {offsets = [0, 32], sizes = [4, 32], strides = [1, 1]} : vector<4x128xf32> to vector<4x32xf32>
    %133 = vector.extract_strided_slice %130 {offsets = [0, 64], sizes = [4, 32], strides = [1, 1]} : vector<4x128xf32> to vector<4x32xf32>
    %cst_36 = arith.constant 2.000000e+00 : f32
    %134 = vector.broadcast %cst_36 : f32 to vector<4x32xf32>
    %135 = arith.mulf %134, %133 : vector<4x32xf32>
    %cst_37 = arith.constant 1.000000e+00 : f32
    %136 = vector.broadcast %cst_37 : f32 to vector<4x32xf32>
    %137 = arith.subf %135, %136 : vector<4x32xf32>
    %138 = vector.extract_strided_slice %130 {offsets = [0, 96], sizes = [4, 32], strides = [1, 1]} : vector<4x128xf32> to vector<4x32xf32>
    %139 = arith.mulf %132, %120 : vector<4x32xf32>
    %140 = arith.mulf %131, %137 : vector<4x32xf32>
    %141 = arith.addf %139, %140 : vector<4x32xf32>
    %142 = math.tanh %141 : vector<4x32xf32>
    %143 = arith.mulf %138, %142 : vector<4x32xf32>
    %144 = vector.extract_strided_slice %15 {offsets = [24, 0], sizes = [4, 128], strides = [1, 1]} : vector<32x128xf32> to vector<4x128xf32>
    %cst_38 = arith.constant dense<0.000000e+00> : vector<4x128xf32>
    %145 = tpu.matmul %143, %11, %cst_38 {dimension_numbers = #tpu.dot_dimension_numbers<[1], [0], [0], [1], [0, 0, 1, 1], [], []>} : vector<4x32xf32>, vector<32x128xf32>, vector<4x128xf32> -> vector<4x128xf32>
    %146 = arith.addf %144, %145 : vector<4x128xf32>
    %147 = arith.negf %146 : vector<4x128xf32>
    %148 = math.exp %147 : vector<4x128xf32>
    %cst_39 = arith.constant 1.000000e+00 : f32
    %149 = vector.broadcast %cst_39 : f32 to vector<4x128xf32>
    %150 = arith.addf %149, %148 : vector<4x128xf32>
    %151 = arith.divf %149, %150 : vector<4x128xf32>
    %152 = vector.extract_strided_slice %151 {offsets = [0, 0], sizes = [4, 32], strides = [1, 1]} : vector<4x128xf32> to vector<4x32xf32>
    %153 = vector.extract_strided_slice %151 {offsets = [0, 32], sizes = [4, 32], strides = [1, 1]} : vector<4x128xf32> to vector<4x32xf32>
    %154 = vector.extract_strided_slice %151 {offsets = [0, 64], sizes = [4, 32], strides = [1, 1]} : vector<4x128xf32> to vector<4x32xf32>
    %cst_40 = arith.constant 2.000000e+00 : f32
    %155 = vector.broadcast %cst_40 : f32 to vector<4x32xf32>
    %156 = arith.mulf %155, %154 : vector<4x32xf32>
    %cst_41 = arith.constant 1.000000e+00 : f32
    %157 = vector.broadcast %cst_41 : f32 to vector<4x32xf32>
    %158 = arith.subf %156, %157 : vector<4x32xf32>
    %159 = vector.extract_strided_slice %151 {offsets = [0, 96], sizes = [4, 32], strides = [1, 1]} : vector<4x128xf32> to vector<4x32xf32>
    %160 = arith.mulf %153, %141 : vector<4x32xf32>
    %161 = arith.mulf %152, %158 : vector<4x32xf32>
    %162 = arith.addf %160, %161 : vector<4x32xf32>
    %163 = math.tanh %162 : vector<4x32xf32>
    %164 = arith.mulf %159, %163 : vector<4x32xf32>
    %165 = vector.extract_strided_slice %15 {offsets = [28, 0], sizes = [4, 128], strides = [1, 1]} : vector<32x128xf32> to vector<4x128xf32>
    %cst_42 = arith.constant dense<0.000000e+00> : vector<4x128xf32>
    %166 = tpu.matmul %164, %11, %cst_42 {dimension_numbers = #tpu.dot_dimension_numbers<[1], [0], [0], [1], [0, 0, 1, 1], [], []>} : vector<4x32xf32>, vector<32x128xf32>, vector<4x128xf32> -> vector<4x128xf32>
    %167 = arith.addf %165, %166 : vector<4x128xf32>
    %168 = arith.negf %167 : vector<4x128xf32>
    %169 = math.exp %168 : vector<4x128xf32>
    %cst_43 = arith.constant 1.000000e+00 : f32
    %170 = vector.broadcast %cst_43 : f32 to vector<4x128xf32>
    %171 = arith.addf %170, %169 : vector<4x128xf32>
    %172 = arith.divf %170, %171 : vector<4x128xf32>
    %173 = vector.extract_strided_slice %172 {offsets = [0, 0], sizes = [4, 32], strides = [1, 1]} : vector<4x128xf32> to vector<4x32xf32>
    %174 = vector.extract_strided_slice %172 {offsets = [0, 32], sizes = [4, 32], strides = [1, 1]} : vector<4x128xf32> to vector<4x32xf32>
    %175 = vector.extract_strided_slice %172 {offsets = [0, 64], sizes = [4, 32], strides = [1, 1]} : vector<4x128xf32> to vector<4x32xf32>
    %cst_44 = arith.constant 2.000000e+00 : f32
    %176 = vector.broadcast %cst_44 : f32 to vector<4x32xf32>
    %177 = arith.mulf %176, %175 : vector<4x32xf32>
    %cst_45 = arith.constant 1.000000e+00 : f32
    %178 = vector.broadcast %cst_45 : f32 to vector<4x32xf32>
    %179 = arith.subf %177, %178 : vector<4x32xf32>
    %180 = vector.extract_strided_slice %172 {offsets = [0, 96], sizes = [4, 32], strides = [1, 1]} : vector<4x128xf32> to vector<4x32xf32>
    %181 = arith.mulf %174, %162 : vector<4x32xf32>
    %182 = arith.mulf %173, %179 : vector<4x32xf32>
    %183 = arith.addf %181, %182 : vector<4x32xf32>
    %184 = math.tanh %183 : vector<4x32xf32>
    %185 = arith.mulf %180, %184 : vector<4x32xf32>
    %186 = tpu.concatenate %38, %59, %80, %101, %122, %143, %164, %185 in 0 : vector<4x32xf32>, vector<4x32xf32>, vector<4x32xf32>, vector<4x32xf32>, vector<4x32xf32>, vector<4x32xf32>, vector<4x32xf32>, vector<4x32xf32> -> vector<32x32xf32>
    %c0_46 = arith.constant 0 : index
    %c0_47 = arith.constant 0 : index
    %187 = vector.load %arg6[%c0_46, %c0_47] : memref<96x32xf32, #tpu.memory_space<vmem>>, vector<32x32xf32>
    %c0_48 = arith.constant 0 : index
    %c0_49 = arith.constant 0 : index
    %188 = vector.load %arg7[%c0_48, %c0_49] : memref<3x32xf32, #tpu.memory_space<vmem>>, vector<1x32xf32>
    %cst_50 = arith.constant dense<0.000000e+00> : vector<32x32xf32>
    %189 = tpu.matmul %186, %187, %cst_50 {dimension_numbers = #tpu.dot_dimension_numbers<[1], [0], [0], [1], [0, 0, 1, 1], [], []>} : vector<32x32xf32>, vector<32x32xf32>, vector<32x32xf32> -> vector<32x32xf32>
    %190 = vector.broadcast %188 : vector<1x32xf32> to vector<32x32xf32>
    %191 = arith.addf %189, %190 : vector<32x32xf32>
    %cst_51 = arith.constant 0.000000e+00 : f32
    %192 = vector.broadcast %cst_51 : f32 to vector<32x32xf32>
    %193 = arith.maximumf %191, %192 : vector<32x32xf32>
    %c64 = arith.constant 64 : index
    %c0_52 = arith.constant 0 : index
    %194 = vector.load %arg4[%c64, %c0_52] : memref<192x128xf32, #tpu.memory_space<vmem>>, vector<32x128xf32>
    %c96 = arith.constant 96 : index
    %c0_53 = arith.constant 0 : index
    %195 = vector.load %arg4[%c96, %c0_53] : memref<192x128xf32, #tpu.memory_space<vmem>>, vector<32x128xf32>
    %c1 = arith.constant 1 : index
    %c0_54 = arith.constant 0 : index
    %196 = vector.load %arg5[%c1, %c0_54] : memref<3x128xf32, #tpu.memory_space<vmem>>, vector<1x128xf32>
    %cst_55 = arith.constant dense<0.000000e+00> : vector<32x128xf32>
    %197 = tpu.matmul %193, %194, %cst_55 {dimension_numbers = #tpu.dot_dimension_numbers<[1], [0], [0], [1], [0, 0, 1, 1], [], []>} : vector<32x32xf32>, vector<32x128xf32>, vector<32x128xf32> -> vector<32x128xf32>
    %198 = vector.broadcast %196 : vector<1x128xf32> to vector<32x128xf32>
    %199 = arith.addf %197, %198 : vector<32x128xf32>
    %cst_56 = arith.constant 0.000000e+00 : f32
    %200 = vector.broadcast %cst_56 : f32 to vector<4x32xf32>
    %cst_57 = arith.constant 0.000000e+00 : f32
    %201 = vector.broadcast %cst_57 : f32 to vector<4x32xf32>
    %202 = vector.extract_strided_slice %199 {offsets = [0, 0], sizes = [4, 128], strides = [1, 1]} : vector<32x128xf32> to vector<4x128xf32>
    %cst_58 = arith.constant dense<0.000000e+00> : vector<4x128xf32>
    %203 = tpu.matmul %200, %195, %cst_58 {dimension_numbers = #tpu.dot_dimension_numbers<[1], [0], [0], [1], [0, 0, 1, 1], [], []>} : vector<4x32xf32>, vector<32x128xf32>, vector<4x128xf32> -> vector<4x128xf32>
    %204 = arith.addf %202, %203 : vector<4x128xf32>
    %205 = arith.negf %204 : vector<4x128xf32>
    %206 = math.exp %205 : vector<4x128xf32>
    %cst_59 = arith.constant 1.000000e+00 : f32
    %207 = vector.broadcast %cst_59 : f32 to vector<4x128xf32>
    %208 = arith.addf %207, %206 : vector<4x128xf32>
    %209 = arith.divf %207, %208 : vector<4x128xf32>
    %210 = vector.extract_strided_slice %209 {offsets = [0, 0], sizes = [4, 32], strides = [1, 1]} : vector<4x128xf32> to vector<4x32xf32>
    %211 = vector.extract_strided_slice %209 {offsets = [0, 32], sizes = [4, 32], strides = [1, 1]} : vector<4x128xf32> to vector<4x32xf32>
    %212 = vector.extract_strided_slice %209 {offsets = [0, 64], sizes = [4, 32], strides = [1, 1]} : vector<4x128xf32> to vector<4x32xf32>
    %cst_60 = arith.constant 2.000000e+00 : f32
    %213 = vector.broadcast %cst_60 : f32 to vector<4x32xf32>
    %214 = arith.mulf %213, %212 : vector<4x32xf32>
    %cst_61 = arith.constant 1.000000e+00 : f32
    %215 = vector.broadcast %cst_61 : f32 to vector<4x32xf32>
    %216 = arith.subf %214, %215 : vector<4x32xf32>
    %217 = vector.extract_strided_slice %209 {offsets = [0, 96], sizes = [4, 32], strides = [1, 1]} : vector<4x128xf32> to vector<4x32xf32>
    %218 = arith.mulf %211, %201 : vector<4x32xf32>
    %219 = arith.mulf %210, %216 : vector<4x32xf32>
    %220 = arith.addf %218, %219 : vector<4x32xf32>
    %221 = math.tanh %220 : vector<4x32xf32>
    %222 = arith.mulf %217, %221 : vector<4x32xf32>
    %223 = vector.extract_strided_slice %199 {offsets = [4, 0], sizes = [4, 128], strides = [1, 1]} : vector<32x128xf32> to vector<4x128xf32>
    %cst_62 = arith.constant dense<0.000000e+00> : vector<4x128xf32>
    %224 = tpu.matmul %222, %195, %cst_62 {dimension_numbers = #tpu.dot_dimension_numbers<[1], [0], [0], [1], [0, 0, 1, 1], [], []>} : vector<4x32xf32>, vector<32x128xf32>, vector<4x128xf32> -> vector<4x128xf32>
    %225 = arith.addf %223, %224 : vector<4x128xf32>
    %226 = arith.negf %225 : vector<4x128xf32>
    %227 = math.exp %226 : vector<4x128xf32>
    %cst_63 = arith.constant 1.000000e+00 : f32
    %228 = vector.broadcast %cst_63 : f32 to vector<4x128xf32>
    %229 = arith.addf %228, %227 : vector<4x128xf32>
    %230 = arith.divf %228, %229 : vector<4x128xf32>
    %231 = vector.extract_strided_slice %230 {offsets = [0, 0], sizes = [4, 32], strides = [1, 1]} : vector<4x128xf32> to vector<4x32xf32>
    %232 = vector.extract_strided_slice %230 {offsets = [0, 32], sizes = [4, 32], strides = [1, 1]} : vector<4x128xf32> to vector<4x32xf32>
    %233 = vector.extract_strided_slice %230 {offsets = [0, 64], sizes = [4, 32], strides = [1, 1]} : vector<4x128xf32> to vector<4x32xf32>
    %cst_64 = arith.constant 2.000000e+00 : f32
    %234 = vector.broadcast %cst_64 : f32 to vector<4x32xf32>
    %235 = arith.mulf %234, %233 : vector<4x32xf32>
    %cst_65 = arith.constant 1.000000e+00 : f32
    %236 = vector.broadcast %cst_65 : f32 to vector<4x32xf32>
    %237 = arith.subf %235, %236 : vector<4x32xf32>
    %238 = vector.extract_strided_slice %230 {offsets = [0, 96], sizes = [4, 32], strides = [1, 1]} : vector<4x128xf32> to vector<4x32xf32>
    %239 = arith.mulf %232, %220 : vector<4x32xf32>
    %240 = arith.mulf %231, %237 : vector<4x32xf32>
    %241 = arith.addf %239, %240 : vector<4x32xf32>
    %242 = math.tanh %241 : vector<4x32xf32>
    %243 = arith.mulf %238, %242 : vector<4x32xf32>
    %244 = vector.extract_strided_slice %199 {offsets = [8, 0], sizes = [4, 128], strides = [1, 1]} : vector<32x128xf32> to vector<4x128xf32>
    %cst_66 = arith.constant dense<0.000000e+00> : vector<4x128xf32>
    %245 = tpu.matmul %243, %195, %cst_66 {dimension_numbers = #tpu.dot_dimension_numbers<[1], [0], [0], [1], [0, 0, 1, 1], [], []>} : vector<4x32xf32>, vector<32x128xf32>, vector<4x128xf32> -> vector<4x128xf32>
    %246 = arith.addf %244, %245 : vector<4x128xf32>
    %247 = arith.negf %246 : vector<4x128xf32>
    %248 = math.exp %247 : vector<4x128xf32>
    %cst_67 = arith.constant 1.000000e+00 : f32
    %249 = vector.broadcast %cst_67 : f32 to vector<4x128xf32>
    %250 = arith.addf %249, %248 : vector<4x128xf32>
    %251 = arith.divf %249, %250 : vector<4x128xf32>
    %252 = vector.extract_strided_slice %251 {offsets = [0, 0], sizes = [4, 32], strides = [1, 1]} : vector<4x128xf32> to vector<4x32xf32>
    %253 = vector.extract_strided_slice %251 {offsets = [0, 32], sizes = [4, 32], strides = [1, 1]} : vector<4x128xf32> to vector<4x32xf32>
    %254 = vector.extract_strided_slice %251 {offsets = [0, 64], sizes = [4, 32], strides = [1, 1]} : vector<4x128xf32> to vector<4x32xf32>
    %cst_68 = arith.constant 2.000000e+00 : f32
    %255 = vector.broadcast %cst_68 : f32 to vector<4x32xf32>
    %256 = arith.mulf %255, %254 : vector<4x32xf32>
    %cst_69 = arith.constant 1.000000e+00 : f32
    %257 = vector.broadcast %cst_69 : f32 to vector<4x32xf32>
    %258 = arith.subf %256, %257 : vector<4x32xf32>
    %259 = vector.extract_strided_slice %251 {offsets = [0, 96], sizes = [4, 32], strides = [1, 1]} : vector<4x128xf32> to vector<4x32xf32>
    %260 = arith.mulf %253, %241 : vector<4x32xf32>
    %261 = arith.mulf %252, %258 : vector<4x32xf32>
    %262 = arith.addf %260, %261 : vector<4x32xf32>
    %263 = math.tanh %262 : vector<4x32xf32>
    %264 = arith.mulf %259, %263 : vector<4x32xf32>
    %265 = vector.extract_strided_slice %199 {offsets = [12, 0], sizes = [4, 128], strides = [1, 1]} : vector<32x128xf32> to vector<4x128xf32>
    %cst_70 = arith.constant dense<0.000000e+00> : vector<4x128xf32>
    %266 = tpu.matmul %264, %195, %cst_70 {dimension_numbers = #tpu.dot_dimension_numbers<[1], [0], [0], [1], [0, 0, 1, 1], [], []>} : vector<4x32xf32>, vector<32x128xf32>, vector<4x128xf32> -> vector<4x128xf32>
    %267 = arith.addf %265, %266 : vector<4x128xf32>
    %268 = arith.negf %267 : vector<4x128xf32>
    %269 = math.exp %268 : vector<4x128xf32>
    %cst_71 = arith.constant 1.000000e+00 : f32
    %270 = vector.broadcast %cst_71 : f32 to vector<4x128xf32>
    %271 = arith.addf %270, %269 : vector<4x128xf32>
    %272 = arith.divf %270, %271 : vector<4x128xf32>
    %273 = vector.extract_strided_slice %272 {offsets = [0, 0], sizes = [4, 32], strides = [1, 1]} : vector<4x128xf32> to vector<4x32xf32>
    %274 = vector.extract_strided_slice %272 {offsets = [0, 32], sizes = [4, 32], strides = [1, 1]} : vector<4x128xf32> to vector<4x32xf32>
    %275 = vector.extract_strided_slice %272 {offsets = [0, 64], sizes = [4, 32], strides = [1, 1]} : vector<4x128xf32> to vector<4x32xf32>
    %cst_72 = arith.constant 2.000000e+00 : f32
    %276 = vector.broadcast %cst_72 : f32 to vector<4x32xf32>
    %277 = arith.mulf %276, %275 : vector<4x32xf32>
    %cst_73 = arith.constant 1.000000e+00 : f32
    %278 = vector.broadcast %cst_73 : f32 to vector<4x32xf32>
    %279 = arith.subf %277, %278 : vector<4x32xf32>
    %280 = vector.extract_strided_slice %272 {offsets = [0, 96], sizes = [4, 32], strides = [1, 1]} : vector<4x128xf32> to vector<4x32xf32>
    %281 = arith.mulf %274, %262 : vector<4x32xf32>
    %282 = arith.mulf %273, %279 : vector<4x32xf32>
    %283 = arith.addf %281, %282 : vector<4x32xf32>
    %284 = math.tanh %283 : vector<4x32xf32>
    %285 = arith.mulf %280, %284 : vector<4x32xf32>
    %286 = vector.extract_strided_slice %199 {offsets = [16, 0], sizes = [4, 128], strides = [1, 1]} : vector<32x128xf32> to vector<4x128xf32>
    %cst_74 = arith.constant dense<0.000000e+00> : vector<4x128xf32>
    %287 = tpu.matmul %285, %195, %cst_74 {dimension_numbers = #tpu.dot_dimension_numbers<[1], [0], [0], [1], [0, 0, 1, 1], [], []>} : vector<4x32xf32>, vector<32x128xf32>, vector<4x128xf32> -> vector<4x128xf32>
    %288 = arith.addf %286, %287 : vector<4x128xf32>
    %289 = arith.negf %288 : vector<4x128xf32>
    %290 = math.exp %289 : vector<4x128xf32>
    %cst_75 = arith.constant 1.000000e+00 : f32
    %291 = vector.broadcast %cst_75 : f32 to vector<4x128xf32>
    %292 = arith.addf %291, %290 : vector<4x128xf32>
    %293 = arith.divf %291, %292 : vector<4x128xf32>
    %294 = vector.extract_strided_slice %293 {offsets = [0, 0], sizes = [4, 32], strides = [1, 1]} : vector<4x128xf32> to vector<4x32xf32>
    %295 = vector.extract_strided_slice %293 {offsets = [0, 32], sizes = [4, 32], strides = [1, 1]} : vector<4x128xf32> to vector<4x32xf32>
    %296 = vector.extract_strided_slice %293 {offsets = [0, 64], sizes = [4, 32], strides = [1, 1]} : vector<4x128xf32> to vector<4x32xf32>
    %cst_76 = arith.constant 2.000000e+00 : f32
    %297 = vector.broadcast %cst_76 : f32 to vector<4x32xf32>
    %298 = arith.mulf %297, %296 : vector<4x32xf32>
    %cst_77 = arith.constant 1.000000e+00 : f32
    %299 = vector.broadcast %cst_77 : f32 to vector<4x32xf32>
    %300 = arith.subf %298, %299 : vector<4x32xf32>
    %301 = vector.extract_strided_slice %293 {offsets = [0, 96], sizes = [4, 32], strides = [1, 1]} : vector<4x128xf32> to vector<4x32xf32>
    %302 = arith.mulf %295, %283 : vector<4x32xf32>
    %303 = arith.mulf %294, %300 : vector<4x32xf32>
    %304 = arith.addf %302, %303 : vector<4x32xf32>
    %305 = math.tanh %304 : vector<4x32xf32>
    %306 = arith.mulf %301, %305 : vector<4x32xf32>
    %307 = vector.extract_strided_slice %199 {offsets = [20, 0], sizes = [4, 128], strides = [1, 1]} : vector<32x128xf32> to vector<4x128xf32>
    %cst_78 = arith.constant dense<0.000000e+00> : vector<4x128xf32>
    %308 = tpu.matmul %306, %195, %cst_78 {dimension_numbers = #tpu.dot_dimension_numbers<[1], [0], [0], [1], [0, 0, 1, 1], [], []>} : vector<4x32xf32>, vector<32x128xf32>, vector<4x128xf32> -> vector<4x128xf32>
    %309 = arith.addf %307, %308 : vector<4x128xf32>
    %310 = arith.negf %309 : vector<4x128xf32>
    %311 = math.exp %310 : vector<4x128xf32>
    %cst_79 = arith.constant 1.000000e+00 : f32
    %312 = vector.broadcast %cst_79 : f32 to vector<4x128xf32>
    %313 = arith.addf %312, %311 : vector<4x128xf32>
    %314 = arith.divf %312, %313 : vector<4x128xf32>
    %315 = vector.extract_strided_slice %314 {offsets = [0, 0], sizes = [4, 32], strides = [1, 1]} : vector<4x128xf32> to vector<4x32xf32>
    %316 = vector.extract_strided_slice %314 {offsets = [0, 32], sizes = [4, 32], strides = [1, 1]} : vector<4x128xf32> to vector<4x32xf32>
    %317 = vector.extract_strided_slice %314 {offsets = [0, 64], sizes = [4, 32], strides = [1, 1]} : vector<4x128xf32> to vector<4x32xf32>
    %cst_80 = arith.constant 2.000000e+00 : f32
    %318 = vector.broadcast %cst_80 : f32 to vector<4x32xf32>
    %319 = arith.mulf %318, %317 : vector<4x32xf32>
    %cst_81 = arith.constant 1.000000e+00 : f32
    %320 = vector.broadcast %cst_81 : f32 to vector<4x32xf32>
    %321 = arith.subf %319, %320 : vector<4x32xf32>
    %322 = vector.extract_strided_slice %314 {offsets = [0, 96], sizes = [4, 32], strides = [1, 1]} : vector<4x128xf32> to vector<4x32xf32>
    %323 = arith.mulf %316, %304 : vector<4x32xf32>
    %324 = arith.mulf %315, %321 : vector<4x32xf32>
    %325 = arith.addf %323, %324 : vector<4x32xf32>
    %326 = math.tanh %325 : vector<4x32xf32>
    %327 = arith.mulf %322, %326 : vector<4x32xf32>
    %328 = vector.extract_strided_slice %199 {offsets = [24, 0], sizes = [4, 128], strides = [1, 1]} : vector<32x128xf32> to vector<4x128xf32>
    %cst_82 = arith.constant dense<0.000000e+00> : vector<4x128xf32>
    %329 = tpu.matmul %327, %195, %cst_82 {dimension_numbers = #tpu.dot_dimension_numbers<[1], [0], [0], [1], [0, 0, 1, 1], [], []>} : vector<4x32xf32>, vector<32x128xf32>, vector<4x128xf32> -> vector<4x128xf32>
    %330 = arith.addf %328, %329 : vector<4x128xf32>
    %331 = arith.negf %330 : vector<4x128xf32>
    %332 = math.exp %331 : vector<4x128xf32>
    %cst_83 = arith.constant 1.000000e+00 : f32
    %333 = vector.broadcast %cst_83 : f32 to vector<4x128xf32>
    %334 = arith.addf %333, %332 : vector<4x128xf32>
    %335 = arith.divf %333, %334 : vector<4x128xf32>
    %336 = vector.extract_strided_slice %335 {offsets = [0, 0], sizes = [4, 32], strides = [1, 1]} : vector<4x128xf32> to vector<4x32xf32>
    %337 = vector.extract_strided_slice %335 {offsets = [0, 32], sizes = [4, 32], strides = [1, 1]} : vector<4x128xf32> to vector<4x32xf32>
    %338 = vector.extract_strided_slice %335 {offsets = [0, 64], sizes = [4, 32], strides = [1, 1]} : vector<4x128xf32> to vector<4x32xf32>
    %cst_84 = arith.constant 2.000000e+00 : f32
    %339 = vector.broadcast %cst_84 : f32 to vector<4x32xf32>
    %340 = arith.mulf %339, %338 : vector<4x32xf32>
    %cst_85 = arith.constant 1.000000e+00 : f32
    %341 = vector.broadcast %cst_85 : f32 to vector<4x32xf32>
    %342 = arith.subf %340, %341 : vector<4x32xf32>
    %343 = vector.extract_strided_slice %335 {offsets = [0, 96], sizes = [4, 32], strides = [1, 1]} : vector<4x128xf32> to vector<4x32xf32>
    %344 = arith.mulf %337, %325 : vector<4x32xf32>
    %345 = arith.mulf %336, %342 : vector<4x32xf32>
    %346 = arith.addf %344, %345 : vector<4x32xf32>
    %347 = math.tanh %346 : vector<4x32xf32>
    %348 = arith.mulf %343, %347 : vector<4x32xf32>
    %349 = vector.extract_strided_slice %199 {offsets = [28, 0], sizes = [4, 128], strides = [1, 1]} : vector<32x128xf32> to vector<4x128xf32>
    %cst_86 = arith.constant dense<0.000000e+00> : vector<4x128xf32>
    %350 = tpu.matmul %348, %195, %cst_86 {dimension_numbers = #tpu.dot_dimension_numbers<[1], [0], [0], [1], [0, 0, 1, 1], [], []>} : vector<4x32xf32>, vector<32x128xf32>, vector<4x128xf32> -> vector<4x128xf32>
    %351 = arith.addf %349, %350 : vector<4x128xf32>
    %352 = arith.negf %351 : vector<4x128xf32>
    %353 = math.exp %352 : vector<4x128xf32>
    %cst_87 = arith.constant 1.000000e+00 : f32
    %354 = vector.broadcast %cst_87 : f32 to vector<4x128xf32>
    %355 = arith.addf %354, %353 : vector<4x128xf32>
    %356 = arith.divf %354, %355 : vector<4x128xf32>
    %357 = vector.extract_strided_slice %356 {offsets = [0, 0], sizes = [4, 32], strides = [1, 1]} : vector<4x128xf32> to vector<4x32xf32>
    %358 = vector.extract_strided_slice %356 {offsets = [0, 32], sizes = [4, 32], strides = [1, 1]} : vector<4x128xf32> to vector<4x32xf32>
    %359 = vector.extract_strided_slice %356 {offsets = [0, 64], sizes = [4, 32], strides = [1, 1]} : vector<4x128xf32> to vector<4x32xf32>
    %cst_88 = arith.constant 2.000000e+00 : f32
    %360 = vector.broadcast %cst_88 : f32 to vector<4x32xf32>
    %361 = arith.mulf %360, %359 : vector<4x32xf32>
    %cst_89 = arith.constant 1.000000e+00 : f32
    %362 = vector.broadcast %cst_89 : f32 to vector<4x32xf32>
    %363 = arith.subf %361, %362 : vector<4x32xf32>
    %364 = vector.extract_strided_slice %356 {offsets = [0, 96], sizes = [4, 32], strides = [1, 1]} : vector<4x128xf32> to vector<4x32xf32>
    %365 = arith.mulf %358, %346 : vector<4x32xf32>
    %366 = arith.mulf %357, %363 : vector<4x32xf32>
    %367 = arith.addf %365, %366 : vector<4x32xf32>
    %368 = math.tanh %367 : vector<4x32xf32>
    %369 = arith.mulf %364, %368 : vector<4x32xf32>
    %370 = tpu.concatenate %222, %243, %264, %285, %306, %327, %348, %369 in 0 : vector<4x32xf32>, vector<4x32xf32>, vector<4x32xf32>, vector<4x32xf32>, vector<4x32xf32>, vector<4x32xf32>, vector<4x32xf32>, vector<4x32xf32> -> vector<32x32xf32>
    %c32_90 = arith.constant 32 : index
    %c0_91 = arith.constant 0 : index
    %371 = vector.load %arg6[%c32_90, %c0_91] : memref<96x32xf32, #tpu.memory_space<vmem>>, vector<32x32xf32>
    %c1_92 = arith.constant 1 : index
    %c0_93 = arith.constant 0 : index
    %372 = vector.load %arg7[%c1_92, %c0_93] : memref<3x32xf32, #tpu.memory_space<vmem>>, vector<1x32xf32>
    %cst_94 = arith.constant dense<0.000000e+00> : vector<32x32xf32>
    %373 = tpu.matmul %370, %371, %cst_94 {dimension_numbers = #tpu.dot_dimension_numbers<[1], [0], [0], [1], [0, 0, 1, 1], [], []>} : vector<32x32xf32>, vector<32x32xf32>, vector<32x32xf32> -> vector<32x32xf32>
    %374 = vector.broadcast %372 : vector<1x32xf32> to vector<32x32xf32>
    %375 = arith.addf %373, %374 : vector<32x32xf32>
    %cst_95 = arith.constant 0.000000e+00 : f32
    %376 = vector.broadcast %cst_95 : f32 to vector<32x32xf32>
    %377 = arith.maximumf %375, %376 : vector<32x32xf32>
    %c128 = arith.constant 128 : index
    %c0_96 = arith.constant 0 : index
    %378 = vector.load %arg4[%c128, %c0_96] : memref<192x128xf32, #tpu.memory_space<vmem>>, vector<32x128xf32>
    %c160 = arith.constant 160 : index
    %c0_97 = arith.constant 0 : index
    %379 = vector.load %arg4[%c160, %c0_97] : memref<192x128xf32, #tpu.memory_space<vmem>>, vector<32x128xf32>
    %c2 = arith.constant 2 : index
    %c0_98 = arith.constant 0 : index
    %380 = vector.load %arg5[%c2, %c0_98] : memref<3x128xf32, #tpu.memory_space<vmem>>, vector<1x128xf32>
    %cst_99 = arith.constant dense<0.000000e+00> : vector<32x128xf32>
    %381 = tpu.matmul %377, %378, %cst_99 {dimension_numbers = #tpu.dot_dimension_numbers<[1], [0], [0], [1], [0, 0, 1, 1], [], []>} : vector<32x32xf32>, vector<32x128xf32>, vector<32x128xf32> -> vector<32x128xf32>
    %382 = vector.broadcast %380 : vector<1x128xf32> to vector<32x128xf32>
    %383 = arith.addf %381, %382 : vector<32x128xf32>
    %cst_100 = arith.constant 0.000000e+00 : f32
    %384 = vector.broadcast %cst_100 : f32 to vector<4x32xf32>
    %cst_101 = arith.constant 0.000000e+00 : f32
    %385 = vector.broadcast %cst_101 : f32 to vector<4x32xf32>
    %386 = vector.extract_strided_slice %383 {offsets = [0, 0], sizes = [4, 128], strides = [1, 1]} : vector<32x128xf32> to vector<4x128xf32>
    %cst_102 = arith.constant dense<0.000000e+00> : vector<4x128xf32>
    %387 = tpu.matmul %384, %379, %cst_102 {dimension_numbers = #tpu.dot_dimension_numbers<[1], [0], [0], [1], [0, 0, 1, 1], [], []>} : vector<4x32xf32>, vector<32x128xf32>, vector<4x128xf32> -> vector<4x128xf32>
    %388 = arith.addf %386, %387 : vector<4x128xf32>
    %389 = arith.negf %388 : vector<4x128xf32>
    %390 = math.exp %389 : vector<4x128xf32>
    %cst_103 = arith.constant 1.000000e+00 : f32
    %391 = vector.broadcast %cst_103 : f32 to vector<4x128xf32>
    %392 = arith.addf %391, %390 : vector<4x128xf32>
    %393 = arith.divf %391, %392 : vector<4x128xf32>
    %394 = vector.extract_strided_slice %393 {offsets = [0, 0], sizes = [4, 32], strides = [1, 1]} : vector<4x128xf32> to vector<4x32xf32>
    %395 = vector.extract_strided_slice %393 {offsets = [0, 32], sizes = [4, 32], strides = [1, 1]} : vector<4x128xf32> to vector<4x32xf32>
    %396 = vector.extract_strided_slice %393 {offsets = [0, 64], sizes = [4, 32], strides = [1, 1]} : vector<4x128xf32> to vector<4x32xf32>
    %cst_104 = arith.constant 2.000000e+00 : f32
    %397 = vector.broadcast %cst_104 : f32 to vector<4x32xf32>
    %398 = arith.mulf %397, %396 : vector<4x32xf32>
    %cst_105 = arith.constant 1.000000e+00 : f32
    %399 = vector.broadcast %cst_105 : f32 to vector<4x32xf32>
    %400 = arith.subf %398, %399 : vector<4x32xf32>
    %401 = vector.extract_strided_slice %393 {offsets = [0, 96], sizes = [4, 32], strides = [1, 1]} : vector<4x128xf32> to vector<4x32xf32>
    %402 = arith.mulf %395, %385 : vector<4x32xf32>
    %403 = arith.mulf %394, %400 : vector<4x32xf32>
    %404 = arith.addf %402, %403 : vector<4x32xf32>
    %405 = math.tanh %404 : vector<4x32xf32>
    %406 = arith.mulf %401, %405 : vector<4x32xf32>
    %407 = vector.extract_strided_slice %383 {offsets = [4, 0], sizes = [4, 128], strides = [1, 1]} : vector<32x128xf32> to vector<4x128xf32>
    %cst_106 = arith.constant dense<0.000000e+00> : vector<4x128xf32>
    %408 = tpu.matmul %406, %379, %cst_106 {dimension_numbers = #tpu.dot_dimension_numbers<[1], [0], [0], [1], [0, 0, 1, 1], [], []>} : vector<4x32xf32>, vector<32x128xf32>, vector<4x128xf32> -> vector<4x128xf32>
    %409 = arith.addf %407, %408 : vector<4x128xf32>
    %410 = arith.negf %409 : vector<4x128xf32>
    %411 = math.exp %410 : vector<4x128xf32>
    %cst_107 = arith.constant 1.000000e+00 : f32
    %412 = vector.broadcast %cst_107 : f32 to vector<4x128xf32>
    %413 = arith.addf %412, %411 : vector<4x128xf32>
    %414 = arith.divf %412, %413 : vector<4x128xf32>
    %415 = vector.extract_strided_slice %414 {offsets = [0, 0], sizes = [4, 32], strides = [1, 1]} : vector<4x128xf32> to vector<4x32xf32>
    %416 = vector.extract_strided_slice %414 {offsets = [0, 32], sizes = [4, 32], strides = [1, 1]} : vector<4x128xf32> to vector<4x32xf32>
    %417 = vector.extract_strided_slice %414 {offsets = [0, 64], sizes = [4, 32], strides = [1, 1]} : vector<4x128xf32> to vector<4x32xf32>
    %cst_108 = arith.constant 2.000000e+00 : f32
    %418 = vector.broadcast %cst_108 : f32 to vector<4x32xf32>
    %419 = arith.mulf %418, %417 : vector<4x32xf32>
    %cst_109 = arith.constant 1.000000e+00 : f32
    %420 = vector.broadcast %cst_109 : f32 to vector<4x32xf32>
    %421 = arith.subf %419, %420 : vector<4x32xf32>
    %422 = vector.extract_strided_slice %414 {offsets = [0, 96], sizes = [4, 32], strides = [1, 1]} : vector<4x128xf32> to vector<4x32xf32>
    %423 = arith.mulf %416, %404 : vector<4x32xf32>
    %424 = arith.mulf %415, %421 : vector<4x32xf32>
    %425 = arith.addf %423, %424 : vector<4x32xf32>
    %426 = math.tanh %425 : vector<4x32xf32>
    %427 = arith.mulf %422, %426 : vector<4x32xf32>
    %428 = vector.extract_strided_slice %383 {offsets = [8, 0], sizes = [4, 128], strides = [1, 1]} : vector<32x128xf32> to vector<4x128xf32>
    %cst_110 = arith.constant dense<0.000000e+00> : vector<4x128xf32>
    %429 = tpu.matmul %427, %379, %cst_110 {dimension_numbers = #tpu.dot_dimension_numbers<[1], [0], [0], [1], [0, 0, 1, 1], [], []>} : vector<4x32xf32>, vector<32x128xf32>, vector<4x128xf32> -> vector<4x128xf32>
    %430 = arith.addf %428, %429 : vector<4x128xf32>
    %431 = arith.negf %430 : vector<4x128xf32>
    %432 = math.exp %431 : vector<4x128xf32>
    %cst_111 = arith.constant 1.000000e+00 : f32
    %433 = vector.broadcast %cst_111 : f32 to vector<4x128xf32>
    %434 = arith.addf %433, %432 : vector<4x128xf32>
    %435 = arith.divf %433, %434 : vector<4x128xf32>
    %436 = vector.extract_strided_slice %435 {offsets = [0, 0], sizes = [4, 32], strides = [1, 1]} : vector<4x128xf32> to vector<4x32xf32>
    %437 = vector.extract_strided_slice %435 {offsets = [0, 32], sizes = [4, 32], strides = [1, 1]} : vector<4x128xf32> to vector<4x32xf32>
    %438 = vector.extract_strided_slice %435 {offsets = [0, 64], sizes = [4, 32], strides = [1, 1]} : vector<4x128xf32> to vector<4x32xf32>
    %cst_112 = arith.constant 2.000000e+00 : f32
    %439 = vector.broadcast %cst_112 : f32 to vector<4x32xf32>
    %440 = arith.mulf %439, %438 : vector<4x32xf32>
    %cst_113 = arith.constant 1.000000e+00 : f32
    %441 = vector.broadcast %cst_113 : f32 to vector<4x32xf32>
    %442 = arith.subf %440, %441 : vector<4x32xf32>
    %443 = vector.extract_strided_slice %435 {offsets = [0, 96], sizes = [4, 32], strides = [1, 1]} : vector<4x128xf32> to vector<4x32xf32>
    %444 = arith.mulf %437, %425 : vector<4x32xf32>
    %445 = arith.mulf %436, %442 : vector<4x32xf32>
    %446 = arith.addf %444, %445 : vector<4x32xf32>
    %447 = math.tanh %446 : vector<4x32xf32>
    %448 = arith.mulf %443, %447 : vector<4x32xf32>
    %449 = vector.extract_strided_slice %383 {offsets = [12, 0], sizes = [4, 128], strides = [1, 1]} : vector<32x128xf32> to vector<4x128xf32>
    %cst_114 = arith.constant dense<0.000000e+00> : vector<4x128xf32>
    %450 = tpu.matmul %448, %379, %cst_114 {dimension_numbers = #tpu.dot_dimension_numbers<[1], [0], [0], [1], [0, 0, 1, 1], [], []>} : vector<4x32xf32>, vector<32x128xf32>, vector<4x128xf32> -> vector<4x128xf32>
    %451 = arith.addf %449, %450 : vector<4x128xf32>
    %452 = arith.negf %451 : vector<4x128xf32>
    %453 = math.exp %452 : vector<4x128xf32>
    %cst_115 = arith.constant 1.000000e+00 : f32
    %454 = vector.broadcast %cst_115 : f32 to vector<4x128xf32>
    %455 = arith.addf %454, %453 : vector<4x128xf32>
    %456 = arith.divf %454, %455 : vector<4x128xf32>
    %457 = vector.extract_strided_slice %456 {offsets = [0, 0], sizes = [4, 32], strides = [1, 1]} : vector<4x128xf32> to vector<4x32xf32>
    %458 = vector.extract_strided_slice %456 {offsets = [0, 32], sizes = [4, 32], strides = [1, 1]} : vector<4x128xf32> to vector<4x32xf32>
    %459 = vector.extract_strided_slice %456 {offsets = [0, 64], sizes = [4, 32], strides = [1, 1]} : vector<4x128xf32> to vector<4x32xf32>
    %cst_116 = arith.constant 2.000000e+00 : f32
    %460 = vector.broadcast %cst_116 : f32 to vector<4x32xf32>
    %461 = arith.mulf %460, %459 : vector<4x32xf32>
    %cst_117 = arith.constant 1.000000e+00 : f32
    %462 = vector.broadcast %cst_117 : f32 to vector<4x32xf32>
    %463 = arith.subf %461, %462 : vector<4x32xf32>
    %464 = vector.extract_strided_slice %456 {offsets = [0, 96], sizes = [4, 32], strides = [1, 1]} : vector<4x128xf32> to vector<4x32xf32>
    %465 = arith.mulf %458, %446 : vector<4x32xf32>
    %466 = arith.mulf %457, %463 : vector<4x32xf32>
    %467 = arith.addf %465, %466 : vector<4x32xf32>
    %468 = math.tanh %467 : vector<4x32xf32>
    %469 = arith.mulf %464, %468 : vector<4x32xf32>
    %470 = vector.extract_strided_slice %383 {offsets = [16, 0], sizes = [4, 128], strides = [1, 1]} : vector<32x128xf32> to vector<4x128xf32>
    %cst_118 = arith.constant dense<0.000000e+00> : vector<4x128xf32>
    %471 = tpu.matmul %469, %379, %cst_118 {dimension_numbers = #tpu.dot_dimension_numbers<[1], [0], [0], [1], [0, 0, 1, 1], [], []>} : vector<4x32xf32>, vector<32x128xf32>, vector<4x128xf32> -> vector<4x128xf32>
    %472 = arith.addf %470, %471 : vector<4x128xf32>
    %473 = arith.negf %472 : vector<4x128xf32>
    %474 = math.exp %473 : vector<4x128xf32>
    %cst_119 = arith.constant 1.000000e+00 : f32
    %475 = vector.broadcast %cst_119 : f32 to vector<4x128xf32>
    %476 = arith.addf %475, %474 : vector<4x128xf32>
    %477 = arith.divf %475, %476 : vector<4x128xf32>
    %478 = vector.extract_strided_slice %477 {offsets = [0, 0], sizes = [4, 32], strides = [1, 1]} : vector<4x128xf32> to vector<4x32xf32>
    %479 = vector.extract_strided_slice %477 {offsets = [0, 32], sizes = [4, 32], strides = [1, 1]} : vector<4x128xf32> to vector<4x32xf32>
    %480 = vector.extract_strided_slice %477 {offsets = [0, 64], sizes = [4, 32], strides = [1, 1]} : vector<4x128xf32> to vector<4x32xf32>
    %cst_120 = arith.constant 2.000000e+00 : f32
    %481 = vector.broadcast %cst_120 : f32 to vector<4x32xf32>
    %482 = arith.mulf %481, %480 : vector<4x32xf32>
    %cst_121 = arith.constant 1.000000e+00 : f32
    %483 = vector.broadcast %cst_121 : f32 to vector<4x32xf32>
    %484 = arith.subf %482, %483 : vector<4x32xf32>
    %485 = vector.extract_strided_slice %477 {offsets = [0, 96], sizes = [4, 32], strides = [1, 1]} : vector<4x128xf32> to vector<4x32xf32>
    %486 = arith.mulf %479, %467 : vector<4x32xf32>
    %487 = arith.mulf %478, %484 : vector<4x32xf32>
    %488 = arith.addf %486, %487 : vector<4x32xf32>
    %489 = math.tanh %488 : vector<4x32xf32>
    %490 = arith.mulf %485, %489 : vector<4x32xf32>
    %491 = vector.extract_strided_slice %383 {offsets = [20, 0], sizes = [4, 128], strides = [1, 1]} : vector<32x128xf32> to vector<4x128xf32>
    %cst_122 = arith.constant dense<0.000000e+00> : vector<4x128xf32>
    %492 = tpu.matmul %490, %379, %cst_122 {dimension_numbers = #tpu.dot_dimension_numbers<[1], [0], [0], [1], [0, 0, 1, 1], [], []>} : vector<4x32xf32>, vector<32x128xf32>, vector<4x128xf32> -> vector<4x128xf32>
    %493 = arith.addf %491, %492 : vector<4x128xf32>
    %494 = arith.negf %493 : vector<4x128xf32>
    %495 = math.exp %494 : vector<4x128xf32>
    %cst_123 = arith.constant 1.000000e+00 : f32
    %496 = vector.broadcast %cst_123 : f32 to vector<4x128xf32>
    %497 = arith.addf %496, %495 : vector<4x128xf32>
    %498 = arith.divf %496, %497 : vector<4x128xf32>
    %499 = vector.extract_strided_slice %498 {offsets = [0, 0], sizes = [4, 32], strides = [1, 1]} : vector<4x128xf32> to vector<4x32xf32>
    %500 = vector.extract_strided_slice %498 {offsets = [0, 32], sizes = [4, 32], strides = [1, 1]} : vector<4x128xf32> to vector<4x32xf32>
    %501 = vector.extract_strided_slice %498 {offsets = [0, 64], sizes = [4, 32], strides = [1, 1]} : vector<4x128xf32> to vector<4x32xf32>
    %cst_124 = arith.constant 2.000000e+00 : f32
    %502 = vector.broadcast %cst_124 : f32 to vector<4x32xf32>
    %503 = arith.mulf %502, %501 : vector<4x32xf32>
    %cst_125 = arith.constant 1.000000e+00 : f32
    %504 = vector.broadcast %cst_125 : f32 to vector<4x32xf32>
    %505 = arith.subf %503, %504 : vector<4x32xf32>
    %506 = vector.extract_strided_slice %498 {offsets = [0, 96], sizes = [4, 32], strides = [1, 1]} : vector<4x128xf32> to vector<4x32xf32>
    %507 = arith.mulf %500, %488 : vector<4x32xf32>
    %508 = arith.mulf %499, %505 : vector<4x32xf32>
    %509 = arith.addf %507, %508 : vector<4x32xf32>
    %510 = math.tanh %509 : vector<4x32xf32>
    %511 = arith.mulf %506, %510 : vector<4x32xf32>
    %512 = vector.extract_strided_slice %383 {offsets = [24, 0], sizes = [4, 128], strides = [1, 1]} : vector<32x128xf32> to vector<4x128xf32>
    %cst_126 = arith.constant dense<0.000000e+00> : vector<4x128xf32>
    %513 = tpu.matmul %511, %379, %cst_126 {dimension_numbers = #tpu.dot_dimension_numbers<[1], [0], [0], [1], [0, 0, 1, 1], [], []>} : vector<4x32xf32>, vector<32x128xf32>, vector<4x128xf32> -> vector<4x128xf32>
    %514 = arith.addf %512, %513 : vector<4x128xf32>
    %515 = arith.negf %514 : vector<4x128xf32>
    %516 = math.exp %515 : vector<4x128xf32>
    %cst_127 = arith.constant 1.000000e+00 : f32
    %517 = vector.broadcast %cst_127 : f32 to vector<4x128xf32>
    %518 = arith.addf %517, %516 : vector<4x128xf32>
    %519 = arith.divf %517, %518 : vector<4x128xf32>
    %520 = vector.extract_strided_slice %519 {offsets = [0, 0], sizes = [4, 32], strides = [1, 1]} : vector<4x128xf32> to vector<4x32xf32>
    %521 = vector.extract_strided_slice %519 {offsets = [0, 32], sizes = [4, 32], strides = [1, 1]} : vector<4x128xf32> to vector<4x32xf32>
    %522 = vector.extract_strided_slice %519 {offsets = [0, 64], sizes = [4, 32], strides = [1, 1]} : vector<4x128xf32> to vector<4x32xf32>
    %cst_128 = arith.constant 2.000000e+00 : f32
    %523 = vector.broadcast %cst_128 : f32 to vector<4x32xf32>
    %524 = arith.mulf %523, %522 : vector<4x32xf32>
    %cst_129 = arith.constant 1.000000e+00 : f32
    %525 = vector.broadcast %cst_129 : f32 to vector<4x32xf32>
    %526 = arith.subf %524, %525 : vector<4x32xf32>
    %527 = vector.extract_strided_slice %519 {offsets = [0, 96], sizes = [4, 32], strides = [1, 1]} : vector<4x128xf32> to vector<4x32xf32>
    %528 = arith.mulf %521, %509 : vector<4x32xf32>
    %529 = arith.mulf %520, %526 : vector<4x32xf32>
    %530 = arith.addf %528, %529 : vector<4x32xf32>
    %531 = math.tanh %530 : vector<4x32xf32>
    %532 = arith.mulf %527, %531 : vector<4x32xf32>
    %533 = vector.extract_strided_slice %383 {offsets = [28, 0], sizes = [4, 128], strides = [1, 1]} : vector<32x128xf32> to vector<4x128xf32>
    %cst_130 = arith.constant dense<0.000000e+00> : vector<4x128xf32>
    %534 = tpu.matmul %532, %379, %cst_130 {dimension_numbers = #tpu.dot_dimension_numbers<[1], [0], [0], [1], [0, 0, 1, 1], [], []>} : vector<4x32xf32>, vector<32x128xf32>, vector<4x128xf32> -> vector<4x128xf32>
    %535 = arith.addf %533, %534 : vector<4x128xf32>
    %536 = arith.negf %535 : vector<4x128xf32>
    %537 = math.exp %536 : vector<4x128xf32>
    %cst_131 = arith.constant 1.000000e+00 : f32
    %538 = vector.broadcast %cst_131 : f32 to vector<4x128xf32>
    %539 = arith.addf %538, %537 : vector<4x128xf32>
    %540 = arith.divf %538, %539 : vector<4x128xf32>
    %541 = vector.extract_strided_slice %540 {offsets = [0, 0], sizes = [4, 32], strides = [1, 1]} : vector<4x128xf32> to vector<4x32xf32>
    %542 = vector.extract_strided_slice %540 {offsets = [0, 32], sizes = [4, 32], strides = [1, 1]} : vector<4x128xf32> to vector<4x32xf32>
    %543 = vector.extract_strided_slice %540 {offsets = [0, 64], sizes = [4, 32], strides = [1, 1]} : vector<4x128xf32> to vector<4x32xf32>
    %cst_132 = arith.constant 2.000000e+00 : f32
    %544 = vector.broadcast %cst_132 : f32 to vector<4x32xf32>
    %545 = arith.mulf %544, %543 : vector<4x32xf32>
    %cst_133 = arith.constant 1.000000e+00 : f32
    %546 = vector.broadcast %cst_133 : f32 to vector<4x32xf32>
    %547 = arith.subf %545, %546 : vector<4x32xf32>
    %548 = vector.extract_strided_slice %540 {offsets = [0, 96], sizes = [4, 32], strides = [1, 1]} : vector<4x128xf32> to vector<4x32xf32>
    %549 = arith.mulf %542, %530 : vector<4x32xf32>
    %550 = arith.mulf %541, %547 : vector<4x32xf32>
    %551 = arith.addf %549, %550 : vector<4x32xf32>
    %552 = math.tanh %551 : vector<4x32xf32>
    %553 = arith.mulf %548, %552 : vector<4x32xf32>
    %554 = tpu.concatenate %406, %427, %448, %469, %490, %511, %532, %553 in 0 : vector<4x32xf32>, vector<4x32xf32>, vector<4x32xf32>, vector<4x32xf32>, vector<4x32xf32>, vector<4x32xf32>, vector<4x32xf32>, vector<4x32xf32> -> vector<32x32xf32>
    %c64_134 = arith.constant 64 : index
    %c0_135 = arith.constant 0 : index
    %555 = vector.load %arg6[%c64_134, %c0_135] : memref<96x32xf32, #tpu.memory_space<vmem>>, vector<32x32xf32>
    %c2_136 = arith.constant 2 : index
    %c0_137 = arith.constant 0 : index
    %556 = vector.load %arg7[%c2_136, %c0_137] : memref<3x32xf32, #tpu.memory_space<vmem>>, vector<1x32xf32>
    %cst_138 = arith.constant dense<0.000000e+00> : vector<32x32xf32>
    %557 = tpu.matmul %554, %555, %cst_138 {dimension_numbers = #tpu.dot_dimension_numbers<[1], [0], [0], [1], [0, 0, 1, 1], [], []>} : vector<32x32xf32>, vector<32x32xf32>, vector<32x32xf32> -> vector<32x32xf32>
    %558 = vector.broadcast %556 : vector<1x32xf32> to vector<32x32xf32>
    %559 = arith.addf %557, %558 : vector<32x32xf32>
    %cst_139 = arith.constant 0.000000e+00 : f32
    %560 = vector.broadcast %cst_139 : f32 to vector<32x32xf32>
    %561 = arith.maximumf %559, %560 : vector<32x32xf32>
    %c0_140 = arith.constant 0 : index
    %c0_141 = arith.constant 0 : index
    %562 = vector.load %arg8[%c0_140, %c0_141] : memref<32x16xf32, #tpu.memory_space<vmem>>, vector<32x16xf32>
    %cst_142 = arith.constant dense<0.000000e+00> : vector<32x16xf32>
    %563 = tpu.matmul %561, %562, %cst_142 {dimension_numbers = #tpu.dot_dimension_numbers<[1], [0], [0], [1], [0, 0, 1, 1], [], []>} : vector<32x32xf32>, vector<32x16xf32>, vector<32x16xf32> -> vector<32x16xf32>
    %c0_143 = arith.constant 0 : index
    %c0_144 = arith.constant 0 : index
    %564 = vector.load %arg9[%c0_143, %c0_144] : memref<1x16xf32, #tpu.memory_space<vmem>>, vector<1x16xf32>
    %565 = vector.broadcast %564 : vector<1x16xf32> to vector<32x16xf32>
    %566 = arith.addf %563, %565 : vector<32x16xf32>
    %567 = vector.broadcast %2 : vector<32x1xf32> to vector<32x16xf32>
    %568 = arith.addf %566, %567 : vector<32x16xf32>
    %c0_145 = arith.constant 0 : index
    %c0_146 = arith.constant 0 : index
    %c0_147 = arith.constant 0 : index
    %569 = vector.load %arg10[%c0_145, %c0_146, %c0_147] : memref<1x32x16xf32, #tpu.memory_space<vmem>>, vector<1x32x16xf32>
    %570 = vector.shape_cast %569 : vector<1x32x16xf32> to vector<32x16xf32>
    %571 = vector.shape_cast %568 : vector<32x16xf32> to vector<1x32x16xf32>
    tpu.vector_store %arg10[%c0_145, %c0_146, %c0_147], %571 {strides = array<i32>} : memref<1x32x16xf32, #tpu.memory_space<vmem>>, vector<1x32x16xf32>,
    return
  }
  func.func @transform_0(%arg0: i32) -> (i32, i32, i32) {
    %c0_i32 = arith.constant 0 : i32
    %c0_i32_0 = arith.constant 0 : i32
    %c0_i32_1 = arith.constant 0 : i32
    return %arg0, %c0_i32, %c0_i32_0 : i32, i32, i32
  }
  func.func @transform_1(%arg0: i32) -> (i32, i32) {
    %c0_i32 = arith.constant 0 : i32
    %c0_i32_0 = arith.constant 0 : i32
    %c0_i32_1 = arith.constant 0 : i32
    return %c0_i32, %c0_i32_0 : i32, i32
  }
  func.func @transform_2(%arg0: i32) -> (i32, i32) {
    %c0_i32 = arith.constant 0 : i32
    %c0_i32_0 = arith.constant 0 : i32
    %c0_i32_1 = arith.constant 0 : i32
    return %c0_i32, %c0_i32_0 : i32, i32
  }
  func.func @transform_3(%arg0: i32) -> (i32, i32) {
    %c0_i32 = arith.constant 0 : i32
    %c0_i32_0 = arith.constant 0 : i32
    %c0_i32_1 = arith.constant 0 : i32
    return %c0_i32, %c0_i32_0 : i32, i32
  }
  func.func @transform_4(%arg0: i32) -> (i32, i32) {
    %c0_i32 = arith.constant 0 : i32
    %c0_i32_0 = arith.constant 0 : i32
    %c0_i32_1 = arith.constant 0 : i32
    return %c0_i32, %c0_i32_0 : i32, i32
  }
  func.func @transform_5(%arg0: i32) -> (i32, i32) {
    %c0_i32 = arith.constant 0 : i32
    %c0_i32_0 = arith.constant 0 : i32
    %c0_i32_1 = arith.constant 0 : i32
    return %c0_i32, %c0_i32_0 : i32, i32
  }
  func.func @transform_6(%arg0: i32) -> (i32, i32) {
    %c0_i32 = arith.constant 0 : i32
    %c0_i32_0 = arith.constant 0 : i32
    %c0_i32_1 = arith.constant 0 : i32
    return %c0_i32, %c0_i32_0 : i32, i32
  }
  func.func @transform_7(%arg0: i32) -> (i32, i32) {
    %c0_i32 = arith.constant 0 : i32
    %c0_i32_0 = arith.constant 0 : i32
    %c0_i32_1 = arith.constant 0 : i32
    return %c0_i32, %c0_i32_0 : i32, i32
  }
  func.func @transform_8(%arg0: i32) -> (i32, i32) {
    %c0_i32 = arith.constant 0 : i32
    %c0_i32_0 = arith.constant 0 : i32
    %c0_i32_1 = arith.constant 0 : i32
    return %c0_i32, %c0_i32_0 : i32, i32
  }
  func.func @transform_9(%arg0: i32) -> (i32, i32, i32) {
    %c0_i32 = arith.constant 0 : i32
    %c0_i32_0 = arith.constant 0 : i32
    %c0_i32_1 = arith.constant 0 : i32
    return %arg0, %c0_i32, %c0_i32_0 : i32, i32, i32
  }
}

</mosaic_0001>

<bundles_post_ra>
// kernel: simple_lstm_forward.1
= control target key start
LH: loop header
LB: loop body
LE: loop exit
PB: predicated region body
PF: predicated region fallthrough
CT: control target
= control target key end

     0   :  { %s4961_s30 = smov 0   ;;  %s5622_s0 = inlined_call_operand.vmem [shape: f32[2,32,16], index: 0, kind: input, shape index: {}]   ;;  %s5623_s1 = inlined_call_operand.vmem [shape: f32[16,32], index: 1, kind: input, shape index: {}]   ;;  %s5624_s2 = inlined_call_operand.vmem [shape: f32[1,32], index: 2, kind: input, shape index: {}]   ;;  %s5625_s3 = inlined_call_operand.vmem [shape: f32[192,128], index: 3, kind: input, shape index: {}]   ;;  %s5626_s4 = inlined_call_operand.vmem [shape: f32[3,128], index: 4, kind: input, shape index: {}]   ;;  %s5627_s5 = inlined_call_operand.vmem [shape: f32[96,32], index: 5, kind: input, shape index: {}]   ;;  %s5628_s6 = inlined_call_operand.vmem [shape: f32[3,32], index: 6, kind: input, shape index: {}]   ;;  %s5629_s7 = inlined_call_operand.vmem [shape: f32[32,16], index: 7, kind: input, shape index: {}]   ;;  %s5630_s8 = inlined_call_operand.vmem [shape: f32[1,16], index: 8, kind: input, shape index: {}]   ;;  %s5631_s9 = inlined_call_operand.vmem [shape: f32[2,32,16], index: 9, kind: output, shape index: {}]  }
   0x1 LB: > { %s3857_s10 = sadd.s32 4294967295, %s4903_s30   ;;  %p3861_p0 = scmp.ge.s32.totalorder %s4903_s30, 1  ;;  %s4903_s30 = sphi %s4961_s30, %s19_s30  }
   0x2   : > { %p287_p1 = scmp.lt.s32.totalorder %s4903_s30, 3 }
   0x4   : > { %p288_p2 = pnand %p3861_p0, %p287_p1 }
   0x5   : > { %p323_p3 = scmp.lt.s32.totalorder (!%p288_p2), %s3857_s10, 1  ;;  %v4905_v0 = vmov (!%p288_p2), 0   ;;  %v361_v2 = vld [vmem:[%s5623_s1] sm:$0xff] (!%p288_p2)  ;;  %v362_v3 = vld [vmem:[%s5623_s1 + $0x8] sm:$0xff] (!%p288_p2)  ;;  %v4906_v11 = vmov (!%p288_p2), 0.0|0.0   ;;  %vm370_vm0 = vcmask (!%p288_p2), 130048  }
   0x6   : > { %291 = sbr.rel (%p288_p2) target bundleno = 18163 (0x46f3), region = 56  ;;  %4751 = vset.pattern.permute.xlu0 (!%p288_p2), %v4905_v0  ;;  %4752 = vset.pattern.permute.xlu1 (!%p288_p2), %v4905_v0  ;;  %v4533_v5 = vpack.c.bf16 (!%p288_p2), %v362_v3, %v361_v2  ;;  %v468_v8 = vld [vmem:[%s5625_s3] sm:$0xff] (!%p288_p2)  ;;  %v469_v9 = vld [vmem:[%s5625_s3 + $0x8] sm:$0xff] (!%p288_p2)  ;;  %v470_v23 = vld [vmem:[%s5625_s3 + $0x10] sm:$0xff] (!%p288_p2)  ;;  %vm4907_vm1 = vmmov (!%p288_p2), 0   ;;  %v4908_v29 = vmov (!%p288_p2), 0.0  }
   0x7   : > { %v4537_v10 = vpack.c.bf16 (!%p288_p2), %v469_v9, %v468_v8  ;;  %v472_v20 = vld [vmem:[%s5625_s3 + $0x20] sm:$0xff] (!%p288_p2)  ;;  %v473_v21 = vld [vmem:[%s5625_s3 + $0x28] sm:$0xff] (!%p288_p2)  ;;  %v471_v24 = vld [vmem:[%s5625_s3 + $0x18] sm:$0xff] (!%p288_p2)  ;;  %vm481_vm2 = vcmask (!%p288_p2), 261120   ;;  %s4909_s21 = smov (!%p288_p2), 64   ;;  %s4910_s22 = smov (!%p288_p2), 32  }
   0x8   : > { %4534 = vmatprep.subr.bf16.mxu0 (!%p288_p2), %v4533_v5  ;;  %v5012_v22 = vpack.c.bf16 (!%p288_p2), %v473_v21, %v472_v20  ;;  %v4541_v25 = vpack.c.bf16 (!%p288_p2), %v471_v24, %v470_v23  ;;  %v474_v26 = vld [vmem:[%s5625_s3 + $0x30] sm:$0xff] (!%p288_p2)  ;;  %v475_v27 = vld [vmem:[%s5625_s3 + $0x38] sm:$0xff] (!%p288_p2)  ;;  %v3866_v30 = vld [vmem:[%s5624_s2] ss:$0 sm:$0xff] (!%p288_p2)  ;;  %vm1421_vm3 = vcmask (!%p288_p2), 1043456  }
   0x9   : > { %4536 = vmatpush3.bf16.msra.mxu0 (!%p288_p2), %v4533_v5  ;;  %4538 = vmatprep.subr.bf16.mxu1 (!%p288_p2), %v4537_v10  ;;  %v5028_v28 = vpack.c.bf16 (!%p288_p2), %v475_v27, %v474_v26  ;;  %v3871_v41 = vld [vmem:[%s5626_s4] ss:$0 sm:$0xff] (!%p288_p2) }
   0xa   : > { %4545 = vmatprep.subr.bf16.mxu0 (!%p288_p2), %v4906_v11  ;;  %4540 = vmatpush3.bf16.msra.mxu1 (!%p288_p2), %v4537_v10 }
   0xb   : > { %4542 = vmatprep.subr.bf16.mxu1 (!%p288_p2), %v4541_v25 }
   0xd   : > { %s5633_s10 = smov (!%p323_p3, %s3857_s10), 1 }
   0xe   : > { %s3977_s11 = sshll.u32 %s5633_s10, 5  ;;  %4544 = vmatpush3.bf16.msra.mxu1 %v4541_v25 }
   0xf   : > { %s327_s14 = scalar_lea.vmem %s5622_s0, %s3977_s11  ;;  %4551 = vmatprep.subr.bf16.mxu1 %v4906_v11  ;;  %s332_s17 = scalar_lea.vmem %s5631_s9, %s3977_s11 }
  0x10   : > { %v333_v1 = vld [vmem:[%s327_s14] sm:$0xff]  ;;  %v334_v4 = vld [vmem:[%s327_s14 + $0x8] sm:$0xff]  ;;  %v335_v6 = vld [vmem:[%s327_s14 + $0x10] sm:$0xff] }
  0x11   : > { %339 = vperm.xlu0 %4751, %v333_v1   ;;  %349 = vperm.xlu1 %4752, %v335_v6   ;;  %v336_v7 = vld [vmem:[%s327_s14 + $0x18] sm:$0xff] }
  0x15   : > { %344 = vperm.xlu0 %4751, %v334_v4   ;;  %354 = vperm.xlu1 %4752, %v336_v7  }
  0x90   : > { %v4990_v12 = vpop.permute.xlu0 %339  ;;  %v4998_v16 = vpop.permute.xlu1 %349 }
  0x91   : > { %v357_v13 = vsub.f32 %v333_v1, %v4990_v12  ;;  %v359_v17 = vsub.f32 %v335_v6, %v4998_v16 }
  0x93   : > { %4165 = vmatprep.mubr.msk.f32.mxu0 %vm370_vm0, %v357_v13 }
  0x94   : > { %v4994_v14 = vpop.permute.xlu0 %344  ;;  %v5002_v18 = vpop.permute.xlu1 %354 }
  0x95   : > { %v358_v15 = vsub.f32 %v334_v4, %v4994_v14  ;;  %v360_v19 = vsub.f32 %v336_v7, %v5002_v18 }
  0x97   : > { %4166 = vmatmul.mubr.msk.f32.vlgmr.msra.gmra.mrb[0].mxu0 %vm370_vm0, %v358_v15 }
  0x98   : > { %4168 = vmatprep.mubr.msk.f32.mxu0 %vm370_vm0, %v359_v17  ;;  %4547 = vmatpush3.bf16.msra.mxu0 %v5012_v22 }
  0x99   : > { %4548 = vmatprep.subr.bf16.mxu0 %v4906_v11 }
  0x9b   : > { %4169 = vmatmul.mubr.msk.f32.gmra.mrb[2].mxu0 %vm370_vm0, %v360_v19 }
  0x9c   : > { %4550 = vmatpush3.bf16.msra.mxu0 %v5028_v28  ;;  %4193 = vmatprep.mubr.msk.f32.mxu0 %vm4907_vm1, %v4908_v29 }
  0x9d   : > { %4557 = vmatprep.subr.bf16.mxu0 %v4906_v11 }
  0x9f   : > { %4194 = vmatmul.mubr.f32.vlgmr.msra.gmra.mrb[4].mxu0 %v4908_v29 }
  0xa0   : > { %4559 = vmatpush3.bf16.msra.mxu0 %v5012_v22  ;;  %4215 = vmatprep.mubr.msk.f32.mxu0 %vm4907_vm1, %v4908_v29 }
  0xa1   : > { %4560 = vmatprep.subr.bf16.mxu0 %v4906_v11 }
  0xa4   : > { %4562 = vmatpush3.bf16.msra.mxu0 %v5028_v28 }
  0xa5   : > { %4569 = vmatprep.subr.bf16.mxu0 %v4906_v11 }
 0x16a   : > { %v4167_v31 = vpop.f32.mrb[0].mxu0 }
 0x16b   : > { %v449_v32 = vpop.f32.mrb[1].mxu0  ;;  %v455_v34 = vadd.f32 %v4167_v31, %v3866_v30 }
 0x16c   : > { %v450_v33 = vadd.f32 %v3866_v30, %v449_v32 }
 0x16e   : > { %4179 = vmatprep.mubr.msk.f32.mxu1 %vm481_vm2, %v450_v33  ;;  %v4170_v35 = vpop.f32.mrb[2].mxu0 }
 0x16f   : > { %4180 = vmatmul.mubr.msk.f32.vlgmr.msra.gmra.mrb[0].mxu1 %vm481_vm2, %v455_v34  ;;  %v465_v36 = vadd.f32 %v4170_v35, %v3866_v30  ;;  %v459_v37 = vpop.f32.mrb[3].mxu0 }
 0x170   : > { %4553 = vmatpush3.bf16.msra.mxu1 %v5012_v22  ;;  %v460_v38 = vadd.f32 %v3866_v30, %v459_v37 }
 0x171   : > { %4554 = vmatprep.subr.bf16.mxu1 %v4906_v11 }
 0x172   : > { %4182 = vmatprep.mubr.msk.f32.mxu1 %vm481_vm2, %v460_v38  ;;  %v648_v39 = vpop.f32.mrb[4].mxu0 }
 0x173   : > { %4183 = vmatmul.mubr.msk.f32.gmra.mrb[2].mxu1 %vm481_vm2, %v465_v36  ;;  %v4195_v40 = vpop.f32.mrb[5].mxu0 }
 0x174   : > { %4556 = vmatpush3.bf16.msra.mxu1 %v5028_v28  ;;  %4204 = vmatprep.mubr.msk.f32.mxu1 %vm4907_vm1, %v4908_v29 }
 0x175   : > { %4563 = vmatprep.subr.bf16.mxu1 %v4906_v11 }
 0x242   : > { %v4181_v42 = vpop.f32.mrb[0].mxu1 }
 0x243   : > { %v5058_v43 = vadd.f32 %v4181_v42, %v3871_v41  ;;  %v560_v44 = vpop.f32.mrb[1].mxu1 }
 0x244   : > { %v561_v45 = vadd.f32 %v3871_v41, %v560_v44 }
 0x246   : > { %v652_v46 = vadd.f32 %v648_v39, %v561_v45  ;;  %v4184_v50 = vpop.f32.mrb[2].mxu1 }
 0x247   : > { %v5060_v51 = vadd.f32 %v4184_v50, %v3871_v41  ;;  %v570_v52 = vpop.f32.mrb[3].mxu1 }
 0x248   : > { %v3876_v47 = vmul.f32 -1.442695, %v652_v46  ;;  %v5062_v53 = vadd.f32 %v3871_v41, %v570_v52 }
 0x24a   : > { %4753 = vpow2.f32 %v3876_v47 }
 0x254   : > { %v4754_v48 = vpop.eup %4753 }
 0x255   : > { %v656_v49 = vadd.f32 1.0, %v4754_v48 }
 0x257   : > { %4755 = vrcp.f32 %v656_v49 }
 0x261   : > { %v4756_v54 = vpop.eup %4755 }
 0x262   : > { %v659_v55 = vmul.f32 2.0, %v4756_v54  ;;  %v661_v59 = vmul.f32 0.0, %v4756_v54 }
 0x264   : > { %v3877_v56 = vadd.f32 -1.0, %v659_v55 }
 0x266   : > { %663 = vrot.lane.b32.xlu0 %v3877_v56, %s4909_s21 }
 0x2d8   : > { %v664_v57 = vpop.permute.xlu0 %663 }
 0x2d9   : > { %v666_v58 = vmul.f32 %v4756_v54, %v664_v57 }
 0x2db   : > { %668 = vrot.lane.b32.xlu1 %v666_v58, %s4910_s22 }
 0x34d   : > { %v669_v60 = vpop.permute.xlu1 %668 }
 0x34e   : > { %v671_v61 = vadd.f32 %v669_v60, %v661_v59 }
 0x350   : > { %4757 = vtanh.f32 %v671_v61  ;;  %v766_v19 = vrot.slane %v671_v61, 4 }
 0x35a   : > { %v4758_v62 = vpop.eup %4757 }
 0x35b   : > { %674 = vrot.lane.b32.xlu0 %v4758_v62, %s4909_s21 }
 0x3cd   : > { %v675_v63 = vpop.permute.xlu0 %674 }
 0x3ce   : > { %v5067_v0 = vmul.f32 %v4756_v54, %v675_v63 }
 0x3d0   : > { %679 = vrot.lane.b32.xlu1 %v5067_v0, %s4910_s22 }
 0x442   : > { %v680_v1 = vpop.permute.xlu1 %679 }
 0x443   : > { %4205 = vmatmul.mubr.msk.f32.vlgmr.msra.gmra.mrb[4].mxu1 %vm481_vm2, %v680_v1 }
 0x444   : > { %4565 = vmatpush3.bf16.msra.mxu1 %v5012_v22  ;;  %4226 = vmatprep.mubr.msk.f32.mxu1 %vm4907_vm1, %v4908_v29 }
 0x445   : > { %4566 = vmatprep.subr.bf16.mxu1 %v4906_v11 }
 0x448   : > { %4568 = vmatpush3.bf16.msra.mxu1 %v5028_v28 }
 0x449   : > { %4575 = vmatprep.subr.bf16.mxu1 %v4906_v11 }
 0x516   : > { %v749_v2 = vpop.f32.mrb[4].mxu1 }
 0x517   : > { %v754_v3 = vrot.slane %v749_v2, 4  ;;  %v4206_v4 = vpop.f32.mrb[5].mxu1 }
 0x519   : > { %v756_v5 = vadd.f32 %v754_v3, %v561_v45 }
 0x51b   : > { %v3879_v6 = vmul.f32 -1.442695, %v756_v5 }
 0x51d   : > { %4759 = vpow2.f32 %v3879_v6 }
 0x527   : > { %v4760_v7 = vpop.eup %4759 }
 0x528   : > { %v760_v8 = vadd.f32 1.0, %v4760_v7 }
 0x52a   : > { %4761 = vrcp.f32 %v760_v8 }
 0x534   : > { %v4762_v9 = vpop.eup %4761 }
 0x535   : > { %v763_v10 = vmul.f32 2.0, %v4762_v9  ;;  %v768_v20 = vmul.f32 %v4762_v9, %v766_v19 }
 0x537   : > { %v3880_v13 = vadd.f32 -1.0, %v763_v10 }
 0x539   : > { %770 = vrot.lane.b32.xlu0 %v3880_v13, %s4909_s21 }
 0x5ab   : > { %v771_v15 = vpop.permute.xlu0 %770 }
 0x5ac   : > { %v773_v17 = vmul.f32 %v4762_v9, %v771_v15 }
 0x5ae   : > { %775 = vrot.lane.b32.xlu1 %v773_v17, %s4910_s22 }
 0x620   : > { %v776_v21 = vpop.permute.xlu1 %775 }
 0x621   : > { %v778_v23 = vadd.f32 %v776_v21, %v768_v20 }
 0x623   : > { %4763 = vtanh.f32 %v778_v23  ;;  %v871_v42 = vrot.slane %v778_v23, 4 }
 0x62d   : > { %v4764_v24 = vpop.eup %4763 }
 0x62e   : > { %781 = vrot.lane.b32.xlu0 %v4764_v24, %s4909_s21 }
 0x6a0   : > { %v782_v25 = vpop.permute.xlu0 %781 }
 0x6a1   : > { %v5081_v26 = vmul.f32 %v4762_v9, %v782_v25 }
 0x6a3   : > { %v786_v27 = vrot.slane %v5081_v26, 4 }
 0x6a5   : > { %787 = vrot.lane.b32.xlu1 %v786_v27, %s4910_s22 }
 0x717   : > { %v788_v30 = vpop.permute.xlu1 %787 }
 0x718   : > { %4216 = vmatmul.mubr.msk.f32.vlgmr.msra.gmra.mrb[6].mxu0 %vm481_vm2, %v788_v30 }
 0x719   : > { %4571 = vmatpush3.bf16.msra.mxu0 %v5012_v22  ;;  %4237 = vmatprep.mubr.msk.f32.mxu0 %vm4907_vm1, %v4908_v29 }
 0x71a   : > { %4572 = vmatprep.subr.bf16.mxu0 %v4906_v11 }
 0x71d   : > { %4574 = vmatpush3.bf16.msra.mxu0 %v5028_v28 }
 0x71e   : > { %4581 = vmatprep.subr.bf16.mxu0 %v4906_v11 }
 0x7eb   : > { %v857_v31 = vpop.f32.mrb[6].mxu0 }
 0x7ec   : > { %v861_v32 = vadd.f32 %v857_v31, %v5058_v43  ;;  %v4217_v33 = vpop.f32.mrb[7].mxu0 }
 0x7ee   : > { %v3882_v34 = vmul.f32 -1.442695, %v861_v32 }
 0x7f0   : > { %4765 = vpow2.f32 %v3882_v34 }
 0x7fa   : > { %v4766_v35 = vpop.eup %4765 }
 0x7fb   : > { %v865_v36 = vadd.f32 1.0, %v4766_v35 }
 0x7fd   : > { %4767 = vrcp.f32 %v865_v36 }
 0x807   : > { %v4768_v37 = vpop.eup %4767 }
 0x808   : > { %v868_v38 = vmul.f32 2.0, %v4768_v37  ;;  %v873_v44 = vmul.f32 %v4768_v37, %v871_v42 }
 0x80a   : > { %v3883_v39 = vadd.f32 -1.0, %v868_v38 }
 0x80c   : > { %875 = vrot.lane.b32.xlu0 %v3883_v39, %s4909_s21 }
 0x87e   : > { %v876_v40 = vpop.permute.xlu0 %875 }
 0x87f   : > { %v878_v41 = vmul.f32 %v4768_v37, %v876_v40 }
 0x881   : > { %880 = vrot.lane.b32.xlu1 %v878_v41, %s4910_s22 }
 0x8f3   : > { %v881_v45 = vpop.permute.xlu1 %880 }
 0x8f4   : > { %v883_v46 = vadd.f32 %v881_v45, %v873_v44 }
 0x8f6   : > { %4769 = vtanh.f32 %v883_v46  ;;  %v978_v2 = vrot.slane %v883_v46, 4 }
 0x900   : > { %v4770_v47 = vpop.eup %4769 }
 0x901   : > { %886 = vrot.lane.b32.xlu0 %v4770_v47, %s4909_s21 }
 0x973   : > { %v887_v48 = vpop.permute.xlu0 %886 }
 0x974   : > { %v5096_v49 = vmul.f32 %v4768_v37, %v887_v48 }
 0x976   : > { %891 = vrot.lane.b32.xlu1 %v5096_v49, %s4910_s22 }
 0x9e8   : > { %v892_v50 = vpop.permute.xlu1 %891 }
 0x9e9   : > { %4227 = vmatmul.mubr.msk.f32.vlgmr.msra.gmra.mrb[6].mxu1 %vm481_vm2, %v892_v50 }
 0x9ea   : > { %4577 = vmatpush3.bf16.msra.mxu1 %v5012_v22  ;;  %4248 = vmatprep.mubr.msk.f32.mxu1 %vm4907_vm1, %v4908_v29 }
 0x9eb   : > { %4578 = vmatprep.subr.bf16.mxu1 %v4906_v11 }
 0x9ee   : > { %4580 = vmatpush3.bf16.msra.mxu1 %v5028_v28 }
 0x9ef   : > { %4587 = vmatprep.subr.bf16.mxu1 %v4906_v11 }
 0xabc   : > { %v961_v52 = vpop.f32.mrb[6].mxu1 }
 0xabd   : > { %v966_v54 = vrot.slane %v961_v52, 4  ;;  %v4228_v55 = vpop.f32.mrb[7].mxu1 }
 0xabf   : > { %v968_v56 = vadd.f32 %v966_v54, %v5058_v43 }
 0xac1   : > { %v3885_v57 = vmul.f32 -1.442695, %v968_v56 }
 0xac3   : > { %4771 = vpow2.f32 %v3885_v57 }
 0xacd   : > { %v4772_v58 = vpop.eup %4771 }
 0xace   : > { %v972_v59 = vadd.f32 1.0, %v4772_v58 }
 0xad0   : > { %4773 = vrcp.f32 %v972_v59 }
 0xada   : > { %v4774_v60 = vpop.eup %4773 }
 0xadb   : > { %v975_v61 = vmul.f32 2.0, %v4774_v60  ;;  %v980_v3 = vmul.f32 %v4774_v60, %v978_v2 }
 0xadd   : > { %v3886_v62 = vadd.f32 -1.0, %v975_v61 }
 0xadf   : > { %982 = vrot.lane.b32.xlu0 %v3886_v62, %s4909_s21 }
 0xb51   : > { %v983_v63 = vpop.permute.xlu0 %982 }
 0xb52   : > { %v985_v1 = vmul.f32 %v4774_v60, %v983_v63 }
 0xb54   : > { %987 = vrot.lane.b32.xlu1 %v985_v1, %s4910_s22 }
 0xbc6   : > { %v988_v4 = vpop.permute.xlu1 %987 }
 0xbc7   : > { %v990_v5 = vadd.f32 %v988_v4, %v980_v3 }
 0xbc9   : > { %4775 = vtanh.f32 %v990_v5  ;;  %v1083_v30 = vrot.slane %v990_v5, 4 }
 0xbd3   : > { %v4776_v43 = vpop.eup %4775 }
 0xbd4   : > { %993 = vrot.lane.b32.xlu0 %v4776_v43, %s4909_s21 }
 0xc46   : > { %v994_v6 = vpop.permute.xlu0 %993 }
 0xc47   : > { %v5111_v7 = vmul.f32 %v4774_v60, %v994_v6 }
 0xc49   : > { %v998_v8 = vrot.slane %v5111_v7, 4 }
 0xc4b   : > { %999 = vrot.lane.b32.xlu1 %v998_v8, %s4910_s22 }
 0xcbd   : > { %v1000_v9 = vpop.permute.xlu1 %999 }
 0xcbe   : > { %4238 = vmatmul.mubr.msk.f32.vlgmr.msra.gmra.mrb[8].mxu0 %vm481_vm2, %v1000_v9 }
 0xcbf   : > { %4583 = vmatpush3.bf16.msra.mxu0 %v5012_v22  ;;  %4259 = vmatprep.mubr.msk.f32.mxu0 %vm4907_vm1, %v4908_v29 }
 0xcc0   : > { %4584 = vmatprep.subr.bf16.mxu0 %v4906_v11 }
 0xcc3   : > { %4586 = vmatpush3.bf16.msra.mxu0 %v5028_v28 }
 0xd91   : > { %v1069_v10 = vpop.f32.mrb[8].mxu0 }
 0xd92   : > { %v1073_v13 = vadd.f32 %v1069_v10, %v5062_v53  ;;  %v4239_v15 = vpop.f32.mrb[9].mxu0 }
 0xd93   : > { %v1426_v15 = vld [vmem:[%s5627_s5] sm:$0xff] }
 0xd94   : > { %v3888_v17 = vmul.f32 -1.442695, %v1073_v13 }
 0xd96   : > { %4777 = vpow2.f32 %v3888_v17  ;;  %v1427_v17 = vld [vmem:[%s5627_s5 + $0x8] sm:$0xff] }
 0xda0   : > { %v4778_v19 = vpop.eup %4777 }
 0xda1   : > { %v1077_v20 = vadd.f32 1.0, %v4778_v19  ;;  %v4593_v19 = vpack.c.bf16 %v1427_v17, %v1426_v15  ;;  %v5253_v15 = vld [vmem:[%s5626_s4 + $0x1] ss:$0 sm:$0xff] }
 0xda3   : > { %4779 = vrcp.f32 %v1077_v20  ;;  %4594 = vmatprep.subr.bf16.mxu0 %v4593_v19 }
 0xdad   : > { %v4780_v21 = vpop.eup %4779 }
 0xdae   : > { %v1080_v23 = vmul.f32 2.0, %v4780_v21  ;;  %v1085_v31 = vmul.f32 %v4780_v21, %v1083_v30 }
 0xdb0   : > { %v3889_v24 = vadd.f32 -1.0, %v1080_v23  ;;  %v1428_v23 = vld [vmem:[%s5627_s5 + $0x10] sm:$0xff] }
 0xdb2   : > { %1087 = vrot.lane.b32.xlu0 %v3889_v24, %s4909_s21  ;;  %v1429_v24 = vld [vmem:[%s5627_s5 + $0x18] sm:$0xff] }
 0xe24   : > { %v1088_v25 = vpop.permute.xlu0 %1087 }
 0xe25   : > { %v1090_v27 = vmul.f32 %v4780_v21, %v1088_v25  ;;  %v4597_v25 = vpack.c.bf16 %v1429_v24, %v1428_v23 }
 0xe27   : > { %1092 = vrot.lane.b32.xlu1 %v1090_v27, %s4910_s22 }
 0xe99   : > { %v1093_v32 = vpop.permute.xlu1 %1092 }
 0xe9a   : > { %v1095_v33 = vadd.f32 %v1093_v32, %v1085_v31 }
 0xe9c   : > { %4781 = vtanh.f32 %v1095_v33 }
 0xea6   : > { %v4782_v34 = vpop.eup %4781 }
 0xea7   : > { %1098 = vrot.lane.b32.xlu0 %v4782_v34, %s4909_s21  ;;  %v1545_v34 = vld [vmem:[%s5625_s3 + $0x48] sm:$0xff] }
 0xf19   : > { %v1099_v35 = vpop.permute.xlu0 %1098 }
 0xf1a   : > { %v5125_v36 = vmul.f32 %v4780_v21, %v1099_v35  ;;  %v1422_v21 = vsel %vm1421_vm3, %v5067_v0, %v5081_v26  ;;  %v1423_v26 = vsel %vm1421_vm3, %v5096_v49, %v5111_v7  ;;  %v1546_v49 = vld [vmem:[%s5625_s3 + $0x50] sm:$0xff]  ;;  %v1547_v7 = vld [vmem:[%s5625_s3 + $0x58] sm:$0xff] }
 0xf1c   : > { %1103 = vrot.lane.b32.xlu1 %v5125_v36, %s4910_s22 }
 0xf8e   : > { %v1104_v37 = vpop.permute.xlu1 %1103 }
 0xf8f   : > { %4249 = vmatmul.mubr.msk.f32.vlgmr.msra.gmra.mrb[8].mxu1 %vm481_vm2, %v1104_v37  ;;  %v4605_v37 = vpack.c.bf16 %v1547_v7, %v1546_v49 }
 0xf90   : > { %4589 = vmatpush3.bf16.msra.mxu1 %v5012_v22  ;;  %4270 = vmatprep.mubr.msk.f32.mxu1 %vm4907_vm1, %v4908_v29 }
 0xf91   : > { %4590 = vmatprep.subr.bf16.mxu1 %v4906_v11 }
 0xf94   : > { %4592 = vmatpush3.bf16.msra.mxu1 %v5028_v28  ;;  %v1190_v28 = vrot.slane %v1095_v33, 4  ;;  %v1544_v33 = vld [vmem:[%s5625_s3 + $0x40] sm:$0xff] }
 0xf95   : > { %v4601_v35 = vpack.c.bf16 %v1545_v34, %v1544_v33 }
 0xf97   : > { %4602 = vmatprep.subr.bf16.mxu1 %v4601_v35 }
0x1062   : > { %v1173_v38 = vpop.f32.mrb[8].mxu1 }
0x1063   : > { %v1178_v39 = vrot.slane %v1173_v38, 4  ;;  %v4250_v40 = vpop.f32.mrb[9].mxu1 }
0x1065   : > { %v1180_v41 = vadd.f32 %v1178_v39, %v5062_v53 }
0x1067   : > { %v3891_v42 = vmul.f32 -1.442695, %v1180_v41  ;;  %v5195_v41 = vld [vmem:[%s5628_s6] ss:$0 sm:$0xff] }
0x1069   : > { %4783 = vpow2.f32 %v3891_v42 }
0x1073   : > { %v4784_v44 = vpop.eup %4783 }
0x1074   : > { %v1184_v45 = vadd.f32 1.0, %v4784_v44 }
0x1076   : > { %4785 = vrcp.f32 %v1184_v45 }
0x1080   : > { %v4786_v46 = vpop.eup %4785 }
0x1081   : > { %v1187_v47 = vmul.f32 2.0, %v4786_v46  ;;  %v1192_v52 = vmul.f32 %v4786_v46, %v1190_v28 }
0x1083   : > { %v3892_v22 = vadd.f32 -1.0, %v1187_v47 }
0x1085   : > { %1194 = vrot.lane.b32.xlu0 %v3892_v22, %s4909_s21 }
0x10f7   : > { %v1195_v48 = vpop.permute.xlu0 %1194 }
0x10f8   : > { %v1197_v50 = vmul.f32 %v4786_v46, %v1195_v48 }
0x10fa   : > { %1199 = vrot.lane.b32.xlu1 %v1197_v50, %s4910_s22 }
0x116c   : > { %v1200_v54 = vpop.permute.xlu1 %1199 }
0x116d   : > { %v1202_v55 = vadd.f32 %v1200_v54, %v1192_v52 }
0x116f   : > { %4787 = vtanh.f32 %v1202_v55  ;;  %v1295_v8 = vrot.slane %v1202_v55, 4 }
0x1179   : > { %v4788_v53 = vpop.eup %4787 }
0x117a   : > { %1205 = vrot.lane.b32.xlu0 %v4788_v53, %s4909_s21 }
0x11ec   : > { %v1206_v56 = vpop.permute.xlu0 %1205 }
0x11ed   : > { %v5139_v57 = vmul.f32 %v4786_v46, %v1206_v56 }
0x11ef   : > { %v1210_v58 = vrot.slane %v5139_v57, 4 }
0x11f1   : > { %1211 = vrot.lane.b32.xlu1 %v1210_v58, %s4910_s22  ;;  %v1424_v58 = vsel %vm1421_vm3, %v5125_v36, %v5139_v57  ;;  %v1549_v36 = vld [vmem:[%s5625_s3 + $0x68] sm:$0xff] }
0x1263   : > { %v1212_v59 = vpop.permute.xlu1 %1211 }
0x1264   : > { %4260 = vmatmul.mubr.msk.f32.vlgmr.msra.gmra.mrb[10].mxu0 %vm481_vm2, %v1212_v59 }
0x1265   : > { %4596 = vmatpush3.bf16.msra.mxu0 %v4593_v19 }
0x1266   : > { %4598 = vmatprep.subr.bf16.mxu0 %v4597_v25 }
0x1269   : > { %4600 = vmatpush3.bf16.msra.mxu0 %v4597_v25 }
0x126a   : > { %4609 = vmatprep.subr.bf16.mxu0 %v4906_v11 }
0x1337   : > { %v1281_v60 = vpop.f32.mrb[10].mxu0 }
0x1338   : > { %v1285_v61 = vadd.f32 %v1281_v60, %v5060_v51  ;;  %v4261_v62 = vpop.f32.mrb[11].mxu0 }
0x133a   : > { %v3894_v63 = vmul.f32 -1.442695, %v1285_v61 }
0x133c   : > { %4789 = vpow2.f32 %v3894_v63 }
0x1346   : > { %v4790_v1 = vpop.eup %4789 }
0x1347   : > { %v1289_v2 = vadd.f32 1.0, %v4790_v1 }
0x1349   : > { %4791 = vrcp.f32 %v1289_v2 }
0x1353   : > { %v4792_v3 = vpop.eup %4791 }
0x1354   : > { %v1292_v4 = vmul.f32 2.0, %v4792_v3  ;;  %v1297_v9 = vmul.f32 %v4792_v3, %v1295_v8 }
0x1356   : > { %v3895_v5 = vadd.f32 -1.0, %v1292_v4 }
0x1358   : > { %1299 = vrot.lane.b32.xlu0 %v3895_v5, %s4909_s21  ;;  %v1550_v5 = vld [vmem:[%s5625_s3 + $0x70] sm:$0xff] }
0x13ca   : > { %v1300_v43 = vpop.permute.xlu0 %1299 }
0x13cb   : > { %v1302_v6 = vmul.f32 %v4792_v3, %v1300_v43  ;;  %v1551_v43 = vld [vmem:[%s5625_s3 + $0x78] sm:$0xff] }
0x13cd   : > { %1304 = vrot.lane.b32.xlu1 %v1302_v6, %s4910_s22  ;;  %v5231_v6 = vpack.c.bf16 %v1551_v43, %v1550_v5 }
0x143f   : > { %v1305_v10 = vpop.permute.xlu1 %1304 }
0x1440   : > { %v5147_v13 = vadd.f32 %v1305_v10, %v1297_v9 }
0x1442   : > { %4793 = vtanh.f32 %v5147_v13  ;;  %v1402_v61 = vrot.slane %v5147_v13, 4 }
0x144c   : > { %v4794_v20 = vpop.eup %4793 }
0x144d   : > { %1310 = vrot.lane.b32.xlu0 %v4794_v20, %s4909_s21 }
0x1451   : > { %1439 = vrot.lane.b32.xlu0 %v1422_v21, %s4910_s22 }
0x14bf   : > { %v1311_v27 = vpop.permute.xlu0 %1310 }
0x14c0   : > { %v5168_v30 = vmul.f32 %v4792_v3, %v1311_v27  ;;  %v1548_v3 = vld [vmem:[%s5625_s3 + $0x60] sm:$0xff] }
0x14c1   : > { %v5218_v57 = vpack.c.bf16 %v1549_v36, %v1548_v3 }
0x14c2   : > { %1315 = vrot.lane.b32.xlu1 %v5168_v30, %s4910_s22 }
0x14c3   : > { %v1440_v0 = vpop.permute.xlu0 %1439 }
0x14c4   : > { %4281 = vmatprep.mubr.msk.f32.mxu0 %vm481_vm2, %v1440_v0 }
0x14c6   : > { %1441 = vrot.lane.b32.xlu1 %v1423_v26, %s4910_s22 }
0x1534   : > { %v1316_v31 = vpop.permute.xlu1 %1315 }
0x1535   : > { %4271 = vmatmul.mubr.msk.f32.vlgmr.msra.gmra.mrb[10].mxu1 %vm481_vm2, %v1316_v31 }
0x1536   : > { %4604 = vmatpush3.bf16.msra.mxu1 %v4601_v35 }
0x1537   : > { %4606 = vmatprep.subr.bf16.mxu1 %v4605_v37 }
0x1538   : > { %v1442_v32 = vpop.permute.xlu1 %1441 }
0x1539   : > { %4282 = vmatmul.mubr.msk.f32.vlgmr.msra.gmra.mrb[12].mxu0 %vm481_vm2, %v1442_v32 }
0x153a   : > { %4608 = vmatpush3.bf16.msra.mxu1 %v4605_v37  ;;  %4611 = vmatpush3.bf16.msra.mxu0 %v5218_v57 }
0x153b   : > { %4615 = vmatprep.subr.bf16.mxu1 %v4906_v11  ;;  %4612 = vmatprep.subr.bf16.mxu0 %v4906_v11 }
0x153e   : > { %4614 = vmatpush3.bf16.msra.mxu0 %v5231_v6 }
0x153f   : > { %4621 = vmatprep.subr.bf16.mxu0 %v4906_v11 }
0x1608   : > { %v1385_v38 = vpop.f32.mrb[10].mxu1 }
0x1609   : > { %v1390_v39 = vrot.slane %v1385_v38, 4  ;;  %v4272_v40 = vpop.f32.mrb[11].mxu1 }
0x160b   : > { %v1392_v42 = vadd.f32 %v1390_v39, %v5060_v51 }
0x160c   : > { %v4283_v44 = vpop.f32.mrb[12].mxu0 }
0x160d   : > { %v3897_v45 = vmul.f32 -1.442695, %v1392_v42  ;;  %v1527_v46 = vadd.f32 %v4283_v44, %v5195_v41  ;;  %v1521_v47 = vpop.f32.mrb[13].mxu0 }
0x160e   : > { %v1522_v22 = vadd.f32 %v5195_v41, %v1521_v47 }
0x160f   : > { %4795 = vpow2.f32 %v3897_v45  ;;  %v1541_v50 = vmax.f32 %v1527_v46, 0.0 }
0x1610   : > { %v1540_v48 = vmax.f32 %v1522_v22, 0.0 }
0x1612   : > { %4295 = vmatprep.mubr.msk.f32.mxu1 %vm481_vm2, %v1540_v48 }
0x1613   : > { %4296 = vmatmul.mubr.msk.f32.vlgmr.msra.gmra.mrb[12].mxu1 %vm481_vm2, %v1541_v50 }
0x1614   : > { %4617 = vmatpush3.bf16.msra.mxu1 %v5218_v57 }
0x1615   : > { %4618 = vmatprep.subr.bf16.mxu1 %v4906_v11 }
0x1618   : > { %4620 = vmatpush3.bf16.msra.mxu1 %v5231_v6 }
0x1619   : > { %v4796_v28 = vpop.eup %4795  ;;  %4627 = vmatprep.subr.bf16.mxu1 %v4906_v11 }
0x161a   : > { %v1396_v52 = vadd.f32 1.0, %v4796_v28 }
0x161c   : > { %4797 = vrcp.f32 %v1396_v52 }
0x1626   : > { %v4798_v54 = vpop.eup %4797 }
0x1627   : > { %v1399_v55 = vmul.f32 2.0, %v4798_v54  ;;  %v1404_v62 = vmul.f32 %v4798_v54, %v1402_v61 }
0x1629   : > { %v3898_v51 = vadd.f32 -1.0, %v1399_v55 }
0x162b   : > { %1406 = vrot.lane.b32.xlu0 %v3898_v51, %s4909_s21 }
0x169d   : > { %v1407_v53 = vpop.permute.xlu0 %1406 }
0x169e   : > { %v1409_v56 = vmul.f32 %v4798_v54, %v1407_v53 }
0x16a0   : > { %1411 = vrot.lane.b32.xlu1 %v1409_v56, %s4910_s22 }
0x16a4   : > { %1443 = vrot.lane.b32.xlu1 %v1424_v58, %s4910_s22 }
0x16e6   : > { %v5208_v59 = vpop.f32.mrb[12].mxu1 }
0x16e7   : > { %v1635_v60 = vpop.f32.mrb[13].mxu1  ;;  %v1641_v5 = vadd.f32 %v5208_v59, %v5253_v15 }
0x16e8   : > { %v1636_v23 = vadd.f32 %v5253_v15, %v1635_v60 }
0x1712   : > { %v1412_v63 = vpop.permute.xlu1 %1411 }
0x1713   : > { %v1414_v1 = vadd.f32 %v1412_v63, %v1404_v62 }
0x1715   : > { %4799 = vtanh.f32 %v1414_v1 }
0x1716   : > { %v1444_v2 = vpop.permute.xlu1 %1443 }
0x1717   : > { %4284 = vmatprep.mubr.msk.f32.mxu0 %vm481_vm2, %v1444_v2 }
0x171f   : > { %v4800_v4 = vpop.eup %4799 }
0x1720   : > { %1417 = vrot.lane.b32.xlu0 %v4800_v4, %s4909_s21 }
0x1792   : > { %v1418_v8 = vpop.permute.xlu0 %1417 }
0x1793   : > { %v1420_v9 = vmul.f32 %v4798_v54, %v1418_v8 }
0x1795   : > { %v1425_v10 = vsel %vm1421_vm3, %v5168_v30, %v1420_v9 }
0x1796   : > { %1445 = vrot.lane.b32.xlu0 %v1425_v10, %s4910_s22 }
0x1808   : > { %v1446_v13 = vpop.permute.xlu0 %1445 }
0x1809   : > { %4285 = vmatmul.mubr.msk.f32.gmra.mrb[14].mxu0 %vm481_vm2, %v1446_v13 }
0x180a   : > { %4309 = vmatprep.mubr.msk.f32.mxu0 %vm4907_vm1, %v4908_v29 }
0x180d   : > { %4310 = vmatmul.mubr.f32.vlgmr.msra.gmra.mrb[16].mxu0 %v4908_v29 }
0x180e   : > { %4623 = vmatpush3.bf16.msra.mxu0 %v5218_v57  ;;  %4331 = vmatprep.mubr.msk.f32.mxu0 %vm4907_vm1, %v4908_v29 }
0x180f   : > { %4624 = vmatprep.subr.bf16.mxu0 %v4906_v11 }
0x1812   : > { %4626 = vmatpush3.bf16.msra.mxu0 %v5231_v6 }
0x1813   : > { %4633 = vmatprep.subr.bf16.mxu0 %v4906_v11 }
0x18dc   : > { %v4286_v17 = vpop.f32.mrb[14].mxu0 }
0x18dd   : > { %v1537_v19 = vadd.f32 %v4286_v17, %v5195_v41  ;;  %v1531_v20 = vpop.f32.mrb[15].mxu0 }
0x18de   : > { %v1532_v21 = vadd.f32 %v5195_v41, %v1531_v20 }
0x18df   : > { %v1543_v27 = vmax.f32 %v1537_v19, 0.0 }
0x18e0   : > { %v1542_v24 = vmax.f32 %v1532_v21, 0.0  ;;  %v1720_v25 = vpop.f32.mrb[16].mxu0 }
0x18e1   : > { %v1724_v30 = vadd.f32 %v1720_v25, %v1636_v23  ;;  %v4311_v0 = vpop.f32.mrb[17].mxu0 }
0x18e2   : > { %4298 = vmatprep.mubr.msk.f32.mxu1 %vm481_vm2, %v1542_v24 }
0x18e3   : > { %v3909_v26 = vmul.f32 -1.442695, %v1724_v30  ;;  %4299 = vmatmul.mubr.msk.f32.gmra.mrb[14].mxu1 %vm481_vm2, %v1543_v27 }
0x18e4   : > { %4320 = vmatprep.mubr.msk.f32.mxu1 %vm4907_vm1, %v4908_v29 }
0x18e5   : > { %4801 = vpow2.f32 %v3909_v26 }
0x18ef   : > { %v4802_v31 = vpop.eup %4801 }
0x18f0   : > { %v1728_v32 = vadd.f32 1.0, %v4802_v31 }
0x18f2   : > { %4803 = vrcp.f32 %v1728_v32 }
0x18fc   : > { %v4804_v33 = vpop.eup %4803 }
0x18fd   : > { %v1731_v34 = vmul.f32 2.0, %v4804_v33  ;;  %v1733_v39 = vmul.f32 0.0, %v4804_v33 }
0x18ff   : > { %v3910_v35 = vadd.f32 -1.0, %v1731_v34 }
0x1901   : > { %1735 = vrot.lane.b32.xlu1 %v3910_v35, %s4909_s21 }
0x1973   : > { %v1736_v49 = vpop.permute.xlu1 %1735 }
0x1974   : > { %v1738_v7 = vmul.f32 %v4804_v33, %v1736_v49 }
0x1976   : > { %1740 = vrot.lane.b32.xlu0 %v1738_v7, %s4910_s22 }
0x19b6   : > { %v5264_v37 = vpop.f32.mrb[14].mxu1 }
0x19b7   : > { %v5266_v38 = vpop.f32.mrb[15].mxu1 }
0x19e8   : > { %v1741_v40 = vpop.permute.xlu0 %1740 }
0x19e9   : > { %v1743_v41 = vadd.f32 %v1741_v40, %v1733_v39 }
0x19eb   : > { %4805 = vtanh.f32 %v1743_v41  ;;  %v1838_v60 = vrot.slane %v1743_v41, 4 }
0x19f5   : > { %v4806_v42 = vpop.eup %4805 }
0x19f6   : > { %1746 = vrot.lane.b32.xlu1 %v4806_v42, %s4909_s21 }
0x1a68   : > { %v1747_v44 = vpop.permute.xlu1 %1746 }
0x1a69   : > { %v5269_v45 = vmul.f32 %v4804_v33, %v1747_v44 }
0x1a6b   : > { %1751 = vrot.lane.b32.xlu0 %v5269_v45, %s4910_s22 }
0x1add   : > { %v1752_v46 = vpop.permute.xlu0 %1751 }
0x1ade   : > { %4321 = vmatmul.mubr.msk.f32.vlgmr.msra.gmra.mrb[16].mxu1 %vm481_vm2, %v1752_v46 }
0x1adf   : > { %4629 = vmatpush3.bf16.msra.mxu1 %v5218_v57  ;;  %4342 = vmatprep.mubr.msk.f32.mxu1 %vm4907_vm1, %v4908_v29 }
0x1ae0   : > { %4630 = vmatprep.subr.bf16.mxu1 %v4906_v11 }
0x1ae3   : > { %4632 = vmatpush3.bf16.msra.mxu1 %v5231_v6 }
0x1ae4   : > { %4639 = vmatprep.subr.bf16.mxu1 %v4906_v11 }
0x1bb1   : > { %v1821_v47 = vpop.f32.mrb[16].mxu1 }
0x1bb2   : > { %v1826_v22 = vrot.slane %v1821_v47, 4  ;;  %v4322_v48 = vpop.f32.mrb[17].mxu1 }
0x1bb4   : > { %v1828_v50 = vadd.f32 %v1826_v22, %v1636_v23 }
0x1bb6   : > { %v3912_v28 = vmul.f32 -1.442695, %v1828_v50 }
0x1bb8   : > { %4807 = vpow2.f32 %v3912_v28 }
0x1bc2   : > { %v4808_v52 = vpop.eup %4807 }
0x1bc3   : > { %v1832_v54 = vadd.f32 1.0, %v4808_v52 }
0x1bc5   : > { %4809 = vrcp.f32 %v1832_v54 }
0x1bcf   : > { %v4810_v55 = vpop.eup %4809 }
0x1bd0   : > { %v1835_v51 = vmul.f32 2.0, %v4810_v55  ;;  %v1840_v61 = vmul.f32 %v4810_v55, %v1838_v60 }
0x1bd2   : > { %v3913_v53 = vadd.f32 -1.0, %v1835_v51 }
0x1bd4   : > { %1842 = vrot.lane.b32.xlu1 %v3913_v53, %s4909_s21 }
0x1c46   : > { %v1843_v56 = vpop.permute.xlu1 %1842 }
0x1c47   : > { %v1845_v58 = vmul.f32 %v4810_v55, %v1843_v56  ;;  %v1646_v56 = vadd.f32 %v5253_v15, %v5266_v38 }
0x1c49   : > { %1847 = vrot.lane.b32.xlu0 %v1845_v58, %s4910_s22 }
0x1cbb   : > { %v1848_v62 = vpop.permute.xlu0 %1847 }
0x1cbc   : > { %v1850_v63 = vadd.f32 %v1848_v62, %v1840_v61 }
0x1cbe   : > { %4811 = vtanh.f32 %v1850_v63  ;;  %v1943_v25 = vrot.slane %v1850_v63, 4 }
0x1cc8   : > { %v4812_v1 = vpop.eup %4811 }
0x1cc9   : > { %1853 = vrot.lane.b32.xlu1 %v4812_v1, %s4909_s21 }
0x1d3b   : > { %v1854_v2 = vpop.permute.xlu1 %1853 }
0x1d3c   : > { %v5283_v3 = vmul.f32 %v4810_v55, %v1854_v2 }
0x1d3e   : > { %v1858_v36 = vrot.slane %v5283_v3, 4 }
0x1d40   : > { %1859 = vrot.lane.b32.xlu0 %v1858_v36, %s4910_s22 }
0x1db2   : > { %v1860_v4 = vpop.permute.xlu0 %1859 }
0x1db3   : > { %4332 = vmatmul.mubr.msk.f32.vlgmr.msra.gmra.mrb[18].mxu0 %vm481_vm2, %v1860_v4 }
0x1db4   : > { %4635 = vmatpush3.bf16.msra.mxu0 %v5218_v57  ;;  %4353 = vmatprep.mubr.msk.f32.mxu0 %vm4907_vm1, %v4908_v29 }
0x1db5   : > { %4636 = vmatprep.subr.bf16.mxu0 %v4906_v11 }
0x1db8   : > { %4638 = vmatpush3.bf16.msra.mxu0 %v5231_v6 }
0x1db9   : > { %4645 = vmatprep.subr.bf16.mxu0 %v4906_v11 }
0x1e86   : > { %v1929_v43 = vpop.f32.mrb[18].mxu0 }
0x1e87   : > { %v1933_v8 = vadd.f32 %v1929_v43, %v1641_v5  ;;  %v4333_v9 = vpop.f32.mrb[19].mxu0 }
0x1e89   : > { %v3915_v10 = vmul.f32 -1.442695, %v1933_v8 }
0x1e8b   : > { %4813 = vpow2.f32 %v3915_v10 }
0x1e95   : > { %v4814_v13 = vpop.eup %4813 }
0x1e96   : > { %v1937_v17 = vadd.f32 1.0, %v4814_v13 }
0x1e98   : > { %4815 = vrcp.f32 %v1937_v17 }
0x1ea2   : > { %v4816_v19 = vpop.eup %4815 }
0x1ea3   : > { %v1940_v20 = vmul.f32 2.0, %v4816_v19  ;;  %v1945_v27 = vmul.f32 %v4816_v19, %v1943_v25 }
0x1ea5   : > { %v3916_v21 = vadd.f32 -1.0, %v1940_v20 }
0x1ea7   : > { %1947 = vrot.lane.b32.xlu1 %v3916_v21, %s4909_s21 }
0x1f19   : > { %v1948_v23 = vpop.permute.xlu1 %1947 }
0x1f1a   : > { %v1950_v24 = vmul.f32 %v4816_v19, %v1948_v23 }
0x1f1c   : > { %1952 = vrot.lane.b32.xlu0 %v1950_v24, %s4910_s22 }
0x1f8e   : > { %v1953_v59 = vpop.permute.xlu0 %1952 }
0x1f8f   : > { %v1955_v30 = vadd.f32 %v1953_v59, %v1945_v27 }
0x1f91   : > { %4817 = vtanh.f32 %v1955_v30  ;;  %v2050_v22 = vrot.slane %v1955_v30, 4 }
0x1f9b   : > { %v4818_v0 = vpop.eup %4817 }
0x1f9c   : > { %1958 = vrot.lane.b32.xlu1 %v4818_v0, %s4909_s21 }
0x200e   : > { %v1959_v26 = vpop.permute.xlu1 %1958 }
0x200f   : > { %v5299_v31 = vmul.f32 %v4816_v19, %v1959_v26 }
0x2011   : > { %1963 = vrot.lane.b32.xlu0 %v5299_v31, %s4910_s22 }
0x2083   : > { %v1964_v32 = vpop.permute.xlu0 %1963 }
0x2084   : > { %4343 = vmatmul.mubr.msk.f32.vlgmr.msra.gmra.mrb[18].mxu1 %vm481_vm2, %v1964_v32 }
0x2085   : > { %4641 = vmatpush3.bf16.msra.mxu1 %v5218_v57  ;;  %4364 = vmatprep.mubr.msk.f32.mxu1 %vm4907_vm1, %v4908_v29 }
0x2086   : > { %4642 = vmatprep.subr.bf16.mxu1 %v4906_v11 }
0x2089   : > { %4644 = vmatpush3.bf16.msra.mxu1 %v5231_v6 }
0x208a   : > { %4651 = vmatprep.subr.bf16.mxu1 %v4906_v11 }
0x2157   : > { %v2033_v33 = vpop.f32.mrb[18].mxu1 }
0x2158   : > { %v2038_v34 = vrot.slane %v2033_v33, 4  ;;  %v4344_v35 = vpop.f32.mrb[19].mxu1 }
0x215a   : > { %v2040_v49 = vadd.f32 %v2038_v34, %v1641_v5 }
0x215c   : > { %v3918_v7 = vmul.f32 -1.442695, %v2040_v49 }
0x215e   : > { %4819 = vpow2.f32 %v3918_v7 }
0x2168   : > { %v4820_v39 = vpop.eup %4819 }
0x2169   : > { %v2044_v40 = vadd.f32 1.0, %v4820_v39 }
0x216b   : > { %4821 = vrcp.f32 %v2044_v40 }
0x2175   : > { %v4822_v41 = vpop.eup %4821 }
0x2176   : > { %v2047_v42 = vmul.f32 2.0, %v4822_v41  ;;  %v2052_v48 = vmul.f32 %v4822_v41, %v2050_v22 }
0x2178   : > { %v3919_v44 = vadd.f32 -1.0, %v2047_v42 }
0x217a   : > { %2054 = vrot.lane.b32.xlu1 %v3919_v44, %s4909_s21  ;;  %v1651_v44 = vadd.f32 %v5264_v37, %v5253_v15 }
0x21ec   : > { %v2055_v46 = vpop.permute.xlu1 %2054 }
0x21ed   : > { %v2057_v47 = vmul.f32 %v4822_v41, %v2055_v46 }
0x21ef   : > { %2059 = vrot.lane.b32.xlu0 %v2057_v47, %s4910_s22 }
0x2261   : > { %v2060_v50 = vpop.permute.xlu0 %2059 }
0x2262   : > { %v2062_v28 = vadd.f32 %v2060_v50, %v2052_v48 }
0x2264   : > { %4823 = vtanh.f32 %v2062_v28  ;;  %v2155_v8 = vrot.slane %v2062_v28, 4 }
0x226e   : > { %v4824_v52 = vpop.eup %4823 }
0x226f   : > { %2065 = vrot.lane.b32.xlu1 %v4824_v52, %s4909_s21 }
0x22e1   : > { %v2066_v54 = vpop.permute.xlu1 %2065 }
0x22e2   : > { %v5313_v55 = vmul.f32 %v4822_v41, %v2066_v54 }
0x22e4   : > { %v2070_v51 = vrot.slane %v5313_v55, 4 }
0x22e6   : > { %2071 = vrot.lane.b32.xlu0 %v2070_v51, %s4910_s22 }
0x2358   : > { %v2072_v53 = vpop.permute.xlu0 %2071 }
0x2359   : > { %4354 = vmatmul.mubr.msk.f32.vlgmr.msra.gmra.mrb[20].mxu0 %vm481_vm2, %v2072_v53 }
0x235a   : > { %4647 = vmatpush3.bf16.msra.mxu0 %v5218_v57  ;;  %4375 = vmatprep.mubr.msk.f32.mxu0 %vm4907_vm1, %v4908_v29 }
0x235b   : > { %4648 = vmatprep.subr.bf16.mxu0 %v4906_v11 }
0x235e   : > { %4650 = vmatpush3.bf16.msra.mxu0 %v5231_v6 }
0x242c   : > { %v2141_v58 = vpop.f32.mrb[20].mxu0 }
0x242d   : > { %v2145_v60 = vadd.f32 %v2141_v58, %v1646_v56  ;;  %v4355_v61 = vpop.f32.mrb[21].mxu0 }
0x242e   : > { %v2497_v61 = vld [vmem:[%s5627_s5 + $0x20] sm:$0xff] }
0x242f   : > { %v3921_v62 = vmul.f32 -1.442695, %v2145_v60 }
0x2431   : > { %4825 = vpow2.f32 %v3921_v62  ;;  %v2498_v62 = vld [vmem:[%s5627_s5 + $0x28] sm:$0xff] }
0x243b   : > { %v4826_v63 = vpop.eup %4825 }
0x243c   : > { %v2149_v1 = vadd.f32 1.0, %v4826_v63  ;;  %v4657_v63 = vpack.c.bf16 %v2498_v62, %v2497_v61  ;;  %v5455_v61 = vld [vmem:[%s5626_s4 + $0x2] ss:$0 sm:$0xff] }
0x243e   : > { %4827 = vrcp.f32 %v2149_v1  ;;  %4658 = vmatprep.subr.bf16.mxu0 %v4657_v63 }
0x2448   : > { %v4828_v2 = vpop.eup %4827 }
0x2449   : > { %v2152_v36 = vmul.f32 2.0, %v4828_v2  ;;  %v2157_v9 = vmul.f32 %v4828_v2, %v2155_v8 }
0x244b   : > { %v3922_v4 = vadd.f32 -1.0, %v2152_v36  ;;  %v2499_v36 = vld [vmem:[%s5627_s5 + $0x30] sm:$0xff] }
0x244d   : > { %2159 = vrot.lane.b32.xlu1 %v3922_v4, %s4909_s21  ;;  %v2500_v4 = vld [vmem:[%s5627_s5 + $0x38] sm:$0xff] }
0x24bf   : > { %v2160_v5 = vpop.permute.xlu1 %2159 }
0x24c0   : > { %v2162_v43 = vmul.f32 %v4828_v2, %v2160_v5  ;;  %v4661_v5 = vpack.c.bf16 %v2500_v4, %v2499_v36 }
0x24c2   : > { %2164 = vrot.lane.b32.xlu0 %v2162_v43, %s4910_s22 }
0x2534   : > { %v2165_v38 = vpop.permute.xlu0 %2164 }
0x2535   : > { %v2167_v10 = vadd.f32 %v2165_v38, %v2157_v9 }
0x2537   : > { %4829 = vtanh.f32 %v2167_v10  ;;  %v2262_v34 = vrot.slane %v2167_v10, 4  ;;  %v2615_v10 = vld [vmem:[%s5625_s3 + $0x80] sm:$0xff] }
0x2541   : > { %v4830_v13 = vpop.eup %4829 }
0x2542   : > { %2170 = vrot.lane.b32.xlu1 %v4830_v13, %s4909_s21  ;;  %v2616_v13 = vld [vmem:[%s5625_s3 + $0x88] sm:$0xff] }
0x25b4   : > { %v2171_v17 = vpop.permute.xlu1 %2170 }
0x25b5   : > { %v5328_v19 = vmul.f32 %v4828_v2, %v2171_v17  ;;  %v2493_v2 = vsel %vm1421_vm3, %v5269_v45, %v5283_v3  ;;  %v2494_v3 = vsel %vm1421_vm3, %v5299_v31, %v5313_v55  ;;  %v4665_v17 = vpack.c.bf16 %v2616_v13, %v2615_v10  ;;  %v2617_v31 = vld [vmem:[%s5625_s3 + $0x90] sm:$0xff]  ;;  %v2618_v55 = vld [vmem:[%s5625_s3 + $0x98] sm:$0xff] }
0x25b7   : > { %2175 = vrot.lane.b32.xlu0 %v5328_v19, %s4910_s22 }
0x2629   : > { %v2176_v20 = vpop.permute.xlu0 %2175 }
0x262a   : > { %4365 = vmatmul.mubr.msk.f32.vlgmr.msra.gmra.mrb[20].mxu1 %vm481_vm2, %v2176_v20  ;;  %v4669_v20 = vpack.c.bf16 %v2618_v55, %v2617_v31 }
0x262b   : > { %4653 = vmatpush3.bf16.msra.mxu1 %v5218_v57  ;;  %4386 = vmatprep.mubr.msk.f32.mxu1 %vm4907_vm1, %v4908_v29 }
0x262c   : > { %4654 = vmatprep.subr.bf16.mxu1 %v4906_v11 }
0x262f   : > { %4656 = vmatpush3.bf16.msra.mxu1 %v5231_v6 }
0x2630   : > { %4666 = vmatprep.subr.bf16.mxu1 %v4665_v17 }
0x26fd   : > { %v2245_v21 = vpop.f32.mrb[20].mxu1 }
0x26fe   : > { %v2250_v23 = vrot.slane %v2245_v21, 4  ;;  %v4366_v24 = vpop.f32.mrb[21].mxu1 }
0x2700   : > { %v2252_v25 = vadd.f32 %v2250_v23, %v1646_v56 }
0x2702   : > { %v3924_v27 = vmul.f32 -1.442695, %v2252_v25  ;;  %v5398_v25 = vld [vmem:[%s5628_s6 + $0x1] ss:$0 sm:$0xff] }
0x2704   : > { %4831 = vpow2.f32 %v3924_v27 }
0x270e   : > { %v4832_v59 = vpop.eup %4831 }
0x270f   : > { %v2256_v30 = vadd.f32 1.0, %v4832_v59 }
0x2711   : > { %4833 = vrcp.f32 %v2256_v30 }
0x271b   : > { %v4834_v0 = vpop.eup %4833 }
0x271c   : > { %v2259_v26 = vmul.f32 2.0, %v4834_v0  ;;  %v2264_v6 = vmul.f32 %v4834_v0, %v2262_v34 }
0x271e   : > { %v3925_v32 = vadd.f32 -1.0, %v2259_v26 }
0x2720   : > { %2266 = vrot.lane.b32.xlu1 %v3925_v32, %s4909_s21 }
0x2792   : > { %v2267_v57 = vpop.permute.xlu1 %2266 }
0x2793   : > { %v2269_v33 = vmul.f32 %v4834_v0, %v2267_v57 }
0x2795   : > { %2271 = vrot.lane.b32.xlu0 %v2269_v33, %s4910_s22 }
0x2807   : > { %v2272_v35 = vpop.permute.xlu0 %2271 }
0x2808   : > { %v2274_v49 = vadd.f32 %v2272_v35, %v2264_v6 }
0x280a   : > { %4835 = vtanh.f32 %v2274_v49  ;;  %v2367_v58 = vrot.slane %v2274_v49, 4 }
0x2814   : > { %v4836_v7 = vpop.eup %4835 }
0x2815   : > { %2277 = vrot.lane.b32.xlu1 %v4836_v7, %s4909_s21 }
0x2887   : > { %v2278_v39 = vpop.permute.xlu1 %2277 }
0x2888   : > { %v5341_v40 = vmul.f32 %v4834_v0, %v2278_v39 }
0x288a   : > { %v2282_v41 = vrot.slane %v5341_v40, 4 }
0x288c   : > { %2283 = vrot.lane.b32.xlu0 %v2282_v41, %s4910_s22 }
0x28fe   : > { %v2284_v42 = vpop.permute.xlu0 %2283 }
0x28ff   : > { %4376 = vmatmul.mubr.msk.f32.vlgmr.msra.gmra.mrb[22].mxu0 %vm481_vm2, %v2284_v42  ;;  %v2495_v42 = vsel %vm1421_vm3, %v5328_v19, %v5341_v40  ;;  %v2620_v19 = vld [vmem:[%s5625_s3 + $0xa8] sm:$0xff] }
0x2900   : > { %4660 = vmatpush3.bf16.msra.mxu0 %v4657_v63 }
0x2901   : > { %4662 = vmatprep.subr.bf16.mxu0 %v4661_v5 }
0x2904   : > { %4664 = vmatpush3.bf16.msra.mxu0 %v4661_v5 }
0x2905   : > { %4673 = vmatprep.subr.bf16.mxu0 %v4906_v11 }
0x29d2   : > { %v2353_v46 = vpop.f32.mrb[22].mxu0 }
0x29d3   : > { %v2357_v47 = vadd.f32 %v2353_v46, %v1651_v44  ;;  %v4377_v22 = vpop.f32.mrb[23].mxu0 }
0x29d5   : > { %v3927_v48 = vmul.f32 -1.442695, %v2357_v47 }
0x29d7   : > { %4837 = vpow2.f32 %v3927_v48 }
0x29e1   : > { %v4838_v50 = vpop.eup %4837 }
0x29e2   : > { %v2361_v28 = vadd.f32 1.0, %v4838_v50 }
0x29e4   : > { %4839 = vrcp.f32 %v2361_v28 }
0x29ee   : > { %v4840_v52 = vpop.eup %4839 }
0x29ef   : > { %v2364_v54 = vmul.f32 2.0, %v4840_v52  ;;  %v2369_v60 = vmul.f32 %v4840_v52, %v2367_v58 }
0x29f1   : > { %v3928_v51 = vadd.f32 -1.0, %v2364_v54 }
0x29f3   : > { %2371 = vrot.lane.b32.xlu1 %v3928_v51, %s4909_s21  ;;  %v2621_v51 = vld [vmem:[%s5625_s3 + $0xb0] sm:$0xff] }
0x2a65   : > { %v2372_v53 = vpop.permute.xlu1 %2371 }
0x2a66   : > { %v2374_v56 = vmul.f32 %v4840_v52, %v2372_v53  ;;  %v2622_v53 = vld [vmem:[%s5625_s3 + $0xb8] sm:$0xff] }
0x2a68   : > { %2376 = vrot.lane.b32.xlu0 %v2374_v56, %s4910_s22  ;;  %v5433_v56 = vpack.c.bf16 %v2622_v53, %v2621_v51 }
0x2ada   : > { %v2377_v15 = vpop.permute.xlu0 %2376 }
0x2adb   : > { %v5350_v37 = vadd.f32 %v2377_v15, %v2369_v60 }
0x2add   : > { %4841 = vtanh.f32 %v5350_v37  ;;  %v2474_v47 = vrot.slane %v5350_v37, 4 }
0x2ae7   : > { %v4842_v1 = vpop.eup %4841 }
0x2ae8   : > { %2382 = vrot.lane.b32.xlu1 %v4842_v1, %s4909_s21 }
0x2aec   : > { %2510 = vrot.lane.b32.xlu1 %v2493_v2, %s4910_s22 }
0x2b5a   : > { %v2383_v43 = vpop.permute.xlu1 %2382 }
0x2b5b   : > { %v5371_v8 = vmul.f32 %v4840_v52, %v2383_v43  ;;  %v2619_v52 = vld [vmem:[%s5625_s3 + $0xa0] sm:$0xff] }
0x2b5c   : > { %v5420_v40 = vpack.c.bf16 %v2620_v19, %v2619_v52 }
0x2b5d   : > { %2387 = vrot.lane.b32.xlu0 %v5371_v8, %s4910_s22 }
0x2b5e   : > { %v2511_v45 = vpop.permute.xlu1 %2510 }
0x2b5f   : > { %4397 = vmatprep.mubr.msk.f32.mxu0 %vm481_vm2, %v2511_v45 }
0x2b61   : > { %2512 = vrot.lane.b32.xlu0 %v2494_v3, %s4910_s22 }
0x2bcf   : > { %v2388_v9 = vpop.permute.xlu0 %2387 }
0x2bd0   : > { %4387 = vmatmul.mubr.msk.f32.vlgmr.msra.gmra.mrb[22].mxu1 %vm481_vm2, %v2388_v9 }
0x2bd1   : > { %4668 = vmatpush3.bf16.msra.mxu1 %v4665_v17 }
0x2bd2   : > { %4670 = vmatprep.subr.bf16.mxu1 %v4669_v20 }
0x2bd3   : > { %v2513_v38 = vpop.permute.xlu0 %2512 }
0x2bd4   : > { %4398 = vmatmul.mubr.msk.f32.vlgmr.msra.gmra.mrb[24].mxu0 %vm481_vm2, %v2513_v38 }
0x2bd5   : > { %4672 = vmatpush3.bf16.msra.mxu1 %v4669_v20  ;;  %4675 = vmatpush3.bf16.msra.mxu0 %v5420_v40 }
0x2bd6   : > { %4679 = vmatprep.subr.bf16.mxu1 %v4906_v11  ;;  %4676 = vmatprep.subr.bf16.mxu0 %v4906_v11 }
0x2bd9   : > { %4678 = vmatpush3.bf16.msra.mxu0 %v5433_v56 }
0x2bda   : > { %4685 = vmatprep.subr.bf16.mxu0 %v4906_v11 }
0x2ca3   : > { %v2457_v21 = vpop.f32.mrb[22].mxu1 }
0x2ca4   : > { %v2462_v23 = vrot.slane %v2457_v21, 4  ;;  %v4388_v24 = vpop.f32.mrb[23].mxu1 }
0x2ca6   : > { %v2464_v27 = vadd.f32 %v2462_v23, %v1651_v44 }
0x2ca7   : > { %v4399_v59 = vpop.f32.mrb[24].mxu0 }
0x2ca8   : > { %v3930_v30 = vmul.f32 -1.442695, %v2464_v27  ;;  %v2598_v0 = vadd.f32 %v4399_v59, %v5398_v25  ;;  %v2592_v26 = vpop.f32.mrb[25].mxu0 }
0x2ca9   : > { %v2593_v32 = vadd.f32 %v5398_v25, %v2592_v26 }
0x2caa   : > { %4843 = vpow2.f32 %v3930_v30  ;;  %v2612_v33 = vmax.f32 %v2598_v0, 0.0 }
0x2cab   : > { %v2611_v57 = vmax.f32 %v2593_v32, 0.0 }
0x2cad   : > { %4411 = vmatprep.mubr.msk.f32.mxu1 %vm481_vm2, %v2611_v57 }
0x2cae   : > { %4412 = vmatmul.mubr.msk.f32.vlgmr.msra.gmra.mrb[24].mxu1 %vm481_vm2, %v2612_v33 }
0x2caf   : > { %4681 = vmatpush3.bf16.msra.mxu1 %v5420_v40 }
0x2cb0   : > { %4682 = vmatprep.subr.bf16.mxu1 %v4906_v11 }
0x2cb3   : > { %4684 = vmatpush3.bf16.msra.mxu1 %v5433_v56 }
0x2cb4   : > { %v4844_v34 = vpop.eup %4843  ;;  %4691 = vmatprep.subr.bf16.mxu1 %v4906_v11 }
0x2cb5   : > { %v2468_v6 = vadd.f32 1.0, %v4844_v34 }
0x2cb7   : > { %4845 = vrcp.f32 %v2468_v6 }
0x2cc1   : > { %v4846_v35 = vpop.eup %4845 }
0x2cc2   : > { %v2471_v49 = vmul.f32 2.0, %v4846_v35  ;;  %v2476_v22 = vmul.f32 %v4846_v35, %v2474_v47 }
0x2cc4   : > { %v3931_v7 = vadd.f32 -1.0, %v2471_v49 }
0x2cc6   : > { %2478 = vrot.lane.b32.xlu1 %v3931_v7, %s4909_s21 }
0x2d38   : > { %v2479_v39 = vpop.permute.xlu1 %2478 }
0x2d39   : > { %v2481_v41 = vmul.f32 %v4846_v35, %v2479_v39 }
0x2d3b   : > { %2483 = vrot.lane.b32.xlu0 %v2481_v41, %s4910_s22 }
0x2d3f   : > { %2514 = vrot.lane.b32.xlu0 %v2495_v42, %s4910_s22 }
0x2d81   : > { %v5410_v44 = vpop.f32.mrb[24].mxu1 }
0x2d82   : > { %v2706_v46 = vpop.f32.mrb[25].mxu1  ;;  %v2712_v51 = vadd.f32 %v5410_v44, %v5455_v61 }
0x2d83   : > { %v2707_v36 = vadd.f32 %v5455_v61, %v2706_v46 }
0x2dad   : > { %v2484_v48 = vpop.permute.xlu0 %2483 }
0x2dae   : > { %v2486_v50 = vadd.f32 %v2484_v48, %v2476_v22 }
0x2db0   : > { %4847 = vtanh.f32 %v2486_v50 }
0x2db1   : > { %v2515_v28 = vpop.permute.xlu0 %2514 }
0x2db2   : > { %4400 = vmatprep.mubr.msk.f32.mxu0 %vm481_vm2, %v2515_v28 }
0x2dba   : > { %v4848_v54 = vpop.eup %4847 }
0x2dbb   : > { %2489 = vrot.lane.b32.xlu1 %v4848_v54, %s4909_s21 }
0x2e2d   : > { %v2490_v58 = vpop.permute.xlu1 %2489 }
0x2e2e   : > { %v2492_v60 = vmul.f32 %v4846_v35, %v2490_v58 }
0x2e30   : > { %v2496_v15 = vsel %vm1421_vm3, %v5371_v8, %v2492_v60 }
0x2e31   : > { %2516 = vrot.lane.b32.xlu1 %v2496_v15, %s4910_s22 }
0x2ea3   : > { %v2517_v37 = vpop.permute.xlu1 %2516 }
0x2ea4   : > { %4401 = vmatmul.mubr.msk.f32.gmra.mrb[26].mxu0 %vm481_vm2, %v2517_v37 }
0x2ea5   : > { %4425 = vmatprep.mubr.msk.f32.mxu0 %vm4907_vm1, %v4908_v29 }
0x2ea8   : > { %4426 = vmatmul.mubr.f32.vlgmr.msra.gmra.mrb[28].mxu0 %v4908_v29 }
0x2ea9   : > { %4687 = vmatpush3.bf16.msra.mxu0 %v5420_v40  ;;  %4447 = vmatprep.mubr.msk.f32.mxu0 %vm4907_vm1, %v4908_v29 }
0x2eaa   : > { %4688 = vmatprep.subr.bf16.mxu0 %v4906_v11 }
0x2ead   : > { %4690 = vmatpush3.bf16.msra.mxu0 %v5433_v56 }
0x2eae   : > { %4697 = vmatprep.subr.bf16.mxu0 %v4906_v11 }
0x2f77   : > { %v4402_v62 = vpop.f32.mrb[26].mxu0 }
0x2f78   : > { %v2608_v63 = vadd.f32 %v4402_v62, %v5398_v25  ;;  %v2602_v1 = vpop.f32.mrb[27].mxu0 }
0x2f79   : > { %v2603_v2 = vadd.f32 %v5398_v25, %v2602_v1 }
0x2f7a   : > { %v2614_v43 = vmax.f32 %v2608_v63, 0.0 }
0x2f7b   : > { %v2613_v4 = vmax.f32 %v2603_v2, 0.0  ;;  %v2791_v5 = vpop.f32.mrb[28].mxu0 }
0x2f7c   : > { %v2795_v8 = vadd.f32 %v2791_v5, %v2707_v36  ;;  %v4427_v45 = vpop.f32.mrb[29].mxu0 }
0x2f7d   : > { %4414 = vmatprep.mubr.msk.f32.mxu1 %vm481_vm2, %v2613_v4 }
0x2f7e   : > { %v3942_v3 = vmul.f32 -1.442695, %v2795_v8  ;;  %4415 = vmatmul.mubr.msk.f32.gmra.mrb[26].mxu1 %vm481_vm2, %v2614_v43 }
0x2f7f   : > { %4436 = vmatprep.mubr.msk.f32.mxu1 %vm4907_vm1, %v4908_v29 }
0x2f80   : > { %4849 = vpow2.f32 %v3942_v3 }
0x2f8a   : > { %v4850_v9 = vpop.eup %4849 }
0x2f8b   : > { %v2799_v38 = vadd.f32 1.0, %v4850_v9 }
0x2f8d   : > { %4851 = vrcp.f32 %v2799_v38 }
0x2f97   : > { %v4852_v10 = vpop.eup %4851 }
0x2f98   : > { %v2802_v13 = vmul.f32 2.0, %v4852_v10  ;;  %v2804_v23 = vmul.f32 0.0, %v4852_v10 }
0x2f9a   : > { %v3943_v17 = vadd.f32 -1.0, %v2802_v13 }
0x2f9c   : > { %2806 = vrot.lane.b32.xlu0 %v3943_v17, %s4909_s21 }
0x300e   : > { %v2807_v31 = vpop.permute.xlu0 %2806 }
0x300f   : > { %v2809_v55 = vmul.f32 %v4852_v10, %v2807_v31 }
0x3011   : > { %2811 = vrot.lane.b32.xlu1 %v2809_v55, %s4910_s22 }
0x3051   : > { %v5466_v20 = vpop.f32.mrb[26].mxu1 }
0x3052   : > { %v5468_v21 = vpop.f32.mrb[27].mxu1 }
0x3083   : > { %v2812_v24 = vpop.permute.xlu1 %2811 }
0x3084   : > { %v2814_v25 = vadd.f32 %v2812_v24, %v2804_v23 }
0x3086   : > { %4853 = vtanh.f32 %v2814_v25  ;;  %v2909_v46 = vrot.slane %v2814_v25, 4 }
0x3090   : > { %v4854_v27 = vpop.eup %4853 }
0x3091   : > { %2817 = vrot.lane.b32.xlu0 %v4854_v27, %s4909_s21 }
0x3103   : > { %v2818_v59 = vpop.permute.xlu0 %2817 }
0x3104   : > { %v5471_v30 = vmul.f32 %v4852_v10, %v2818_v59 }
0x3106   : > { %2822 = vrot.lane.b32.xlu1 %v5471_v30, %s4910_s22 }
0x3178   : > { %v2823_v0 = vpop.permute.xlu1 %2822 }
0x3179   : > { %4437 = vmatmul.mubr.msk.f32.vlgmr.msra.gmra.mrb[28].mxu1 %vm481_vm2, %v2823_v0 }
0x317a   : > { %4693 = vmatpush3.bf16.msra.mxu1 %v5420_v40  ;;  %4458 = vmatprep.mubr.msk.f32.mxu1 %vm4907_vm1, %v4908_v29 }
0x317b   : > { %4694 = vmatprep.subr.bf16.mxu1 %v4906_v11 }
0x317e   : > { %4696 = vmatpush3.bf16.msra.mxu1 %v5433_v56 }
0x317f   : > { %4703 = vmatprep.subr.bf16.mxu1 %v4906_v11 }
0x324c   : > { %v2892_v26 = vpop.f32.mrb[28].mxu1 }
0x324d   : > { %v2897_v32 = vrot.slane %v2892_v26, 4  ;;  %v4438_v57 = vpop.f32.mrb[29].mxu1 }
0x324f   : > { %v2899_v33 = vadd.f32 %v2897_v32, %v2707_v36 }
0x3251   : > { %v3945_v34 = vmul.f32 -1.442695, %v2899_v33 }
0x3253   : > { %4855 = vpow2.f32 %v3945_v34 }
0x325d   : > { %v4856_v6 = vpop.eup %4855 }
0x325e   : > { %v2903_v35 = vadd.f32 1.0, %v4856_v6 }
0x3260   : > { %4857 = vrcp.f32 %v2903_v35 }
0x326a   : > { %v4858_v49 = vpop.eup %4857 }
0x326b   : > { %v2906_v7 = vmul.f32 2.0, %v4858_v49  ;;  %v2911_v47 = vmul.f32 %v4858_v49, %v2909_v46 }
0x326d   : > { %v3946_v39 = vadd.f32 -1.0, %v2906_v7 }
0x326f   : > { %2913 = vrot.lane.b32.xlu0 %v3946_v39, %s4909_s21 }
0x32e1   : > { %v2914_v41 = vpop.permute.xlu0 %2913 }
0x32e2   : > { %v2916_v42 = vmul.f32 %v4858_v49, %v2914_v41  ;;  %v2717_v41 = vadd.f32 %v5455_v61, %v5468_v21 }
0x32e4   : > { %2918 = vrot.lane.b32.xlu1 %v2916_v42, %s4910_s22 }
0x3356   : > { %v2919_v22 = vpop.permute.xlu1 %2918 }
0x3357   : > { %v2921_v48 = vadd.f32 %v2919_v22, %v2911_v47 }
0x3359   : > { %4859 = vtanh.f32 %v2921_v48  ;;  %v3014_v5 = vrot.slane %v2921_v48, 4 }
0x3363   : > { %v4860_v50 = vpop.eup %4859 }
0x3364   : > { %2924 = vrot.lane.b32.xlu0 %v4860_v50, %s4909_s21 }
0x33d6   : > { %v2925_v28 = vpop.permute.xlu0 %2924 }
0x33d7   : > { %v5485_v52 = vmul.f32 %v4858_v49, %v2925_v28 }
0x33d9   : > { %v2929_v19 = vrot.slane %v5485_v52, 4 }
0x33db   : > { %2930 = vrot.lane.b32.xlu1 %v2929_v19, %s4910_s22 }
0x344d   : > { %v2931_v54 = vpop.permute.xlu1 %2930 }
0x344e   : > { %4448 = vmatmul.mubr.msk.f32.vlgmr.msra.gmra.mrb[30].mxu0 %vm481_vm2, %v2931_v54 }
0x344f   : > { %4699 = vmatpush3.bf16.msra.mxu0 %v5420_v40  ;;  %4469 = vmatprep.mubr.msk.f32.mxu0 %vm4907_vm1, %v4908_v29 }
0x3450   : > { %4700 = vmatprep.subr.bf16.mxu0 %v4906_v11 }
0x3453   : > { %4702 = vmatpush3.bf16.msra.mxu0 %v5433_v56 }
0x3454   : > { %4709 = vmatprep.subr.bf16.mxu0 %v4906_v11 }
0x3521   : > { %v3000_v53 = vpop.f32.mrb[30].mxu0 }
0x3522   : > { %v3004_v58 = vadd.f32 %v3000_v53, %v2712_v51  ;;  %v4449_v60 = vpop.f32.mrb[31].mxu0 }
0x3524   : > { %v3948_v15 = vmul.f32 -1.442695, %v3004_v58 }
0x3526   : > { %4861 = vpow2.f32 %v3948_v15 }
0x3530   : > { %v4862_v37 = vpop.eup %4861 }
0x3531   : > { %v3008_v62 = vadd.f32 1.0, %v4862_v37 }
0x3533   : > { %4863 = vrcp.f32 %v3008_v62 }
0x353d   : > { %v4864_v63 = vpop.eup %4863 }
0x353e   : > { %v3011_v1 = vmul.f32 2.0, %v4864_v63  ;;  %v3016_v43 = vmul.f32 %v4864_v63, %v3014_v5 }
0x3540   : > { %v3949_v2 = vadd.f32 -1.0, %v3011_v1 }
0x3542   : > { %3018 = vrot.lane.b32.xlu0 %v3949_v2, %s4909_s21 }
0x35b4   : > { %v3019_v36 = vpop.permute.xlu0 %3018 }
0x35b5   : > { %v3021_v4 = vmul.f32 %v4864_v63, %v3019_v36 }
0x35b7   : > { %3023 = vrot.lane.b32.xlu1 %v3021_v4, %s4910_s22 }
0x3629   : > { %v3024_v44 = vpop.permute.xlu1 %3023 }
0x362a   : > { %v3026_v8 = vadd.f32 %v3024_v44, %v3016_v43 }
0x362c   : > { %4865 = vtanh.f32 %v3026_v8  ;;  %v3121_v32 = vrot.slane %v3026_v8, 4 }
0x3636   : > { %v4866_v45 = vpop.eup %4865 }
0x3637   : > { %3029 = vrot.lane.b32.xlu0 %v4866_v45, %s4909_s21 }
0x36a9   : > { %v3030_v3 = vpop.permute.xlu0 %3029 }
0x36aa   : > { %v5501_v9 = vmul.f32 %v4864_v63, %v3030_v3 }
0x36ac   : > { %3034 = vrot.lane.b32.xlu1 %v5501_v9, %s4910_s22 }
0x371e   : > { %v3035_v38 = vpop.permute.xlu1 %3034 }
0x371f   : > { %4459 = vmatmul.mubr.msk.f32.vlgmr.msra.gmra.mrb[30].mxu1 %vm481_vm2, %v3035_v38 }
0x3720   : > { %4705 = vmatpush3.bf16.msra.mxu1 %v5420_v40  ;;  %4480 = vmatprep.mubr.msk.f32.mxu1 %vm4907_vm1, %v4908_v29 }
0x3721   : > { %4706 = vmatprep.subr.bf16.mxu1 %v4906_v11 }
0x3724   : > { %4708 = vmatpush3.bf16.msra.mxu1 %v5433_v56 }
0x3725   : > { %4715 = vmatprep.subr.bf16.mxu1 %v4906_v11 }
0x37f2   : > { %v3104_v10 = vpop.f32.mrb[30].mxu1 }
0x37f3   : > { %v3109_v13 = vrot.slane %v3104_v10, 4  ;;  %v4460_v17 = vpop.f32.mrb[31].mxu1 }
0x37f5   : > { %v3111_v31 = vadd.f32 %v3109_v13, %v2712_v51 }
0x37f7   : > { %v3951_v55 = vmul.f32 -1.442695, %v3111_v31 }
0x37f9   : > { %4867 = vpow2.f32 %v3951_v55 }
0x3803   : > { %v4868_v23 = vpop.eup %4867 }
0x3804   : > { %v3115_v24 = vadd.f32 1.0, %v4868_v23 }
0x3806   : > { %4869 = vrcp.f32 %v3115_v24 }
0x3810   : > { %v4870_v25 = vpop.eup %4869 }
0x3811   : > { %v3118_v27 = vmul.f32 2.0, %v4870_v25  ;;  %v3123_v57 = vmul.f32 %v4870_v25, %v3121_v32 }
0x3813   : > { %v3952_v59 = vadd.f32 -1.0, %v3118_v27 }
0x3815   : > { %3125 = vrot.lane.b32.xlu0 %v3952_v59, %s4909_s21 }
0x3887   : > { %v3126_v0 = vpop.permute.xlu0 %3125 }
0x3888   : > { %v3128_v26 = vmul.f32 %v4870_v25, %v3126_v0 }
0x388a   : > { %3130 = vrot.lane.b32.xlu1 %v3128_v26, %s4910_s22 }
0x38fc   : > { %v3131_v33 = vpop.permute.xlu1 %3130 }
0x38fd   : > { %v3133_v34 = vadd.f32 %v3131_v33, %v3123_v57 }
0x38ff   : > { %4871 = vtanh.f32 %v3133_v34  ;;  %v3226_v58 = vrot.slane %v3133_v34, 4 }
0x3909   : > { %v4872_v6 = vpop.eup %4871 }
0x390a   : > { %3136 = vrot.lane.b32.xlu0 %v4872_v6, %s4909_s21 }
0x397c   : > { %v3137_v35 = vpop.permute.xlu0 %3136 }
0x397d   : > { %v5515_v49 = vmul.f32 %v4870_v25, %v3137_v35  ;;  %v2722_v25 = vadd.f32 %v5466_v20, %v5455_v61 }
0x397f   : > { %v3141_v7 = vrot.slane %v5515_v49, 4 }
0x3981   : > { %3142 = vrot.lane.b32.xlu1 %v3141_v7, %s4910_s22 }
0x39f3   : > { %v3143_v39 = vpop.permute.xlu1 %3142 }
0x39f4   : > { %4470 = vmatmul.mubr.msk.f32.vlgmr.msra.gmra.mrb[32].mxu0 %vm481_vm2, %v3143_v39 }
0x39f5   : > { %4711 = vmatpush3.bf16.msra.mxu0 %v5420_v40  ;;  %4491 = vmatprep.mubr.msk.f32.mxu0 %vm4907_vm1, %v4908_v29 }
0x39f6   : > { %4712 = vmatprep.subr.bf16.mxu0 %v4906_v11 }
0x39f9   : > { %4714 = vmatpush3.bf16.msra.mxu0 %v5433_v56 }
0x3ac7   : > { %v3212_v42 = vpop.f32.mrb[32].mxu0 }
0x3ac8   : > { %v3216_v46 = vadd.f32 %v3212_v42, %v2717_v41  ;;  %v4471_v47 = vpop.f32.mrb[33].mxu0 }
0x3aca   : > { %v3954_v22 = vmul.f32 -1.442695, %v3216_v46 }
0x3acc   : > { %4873 = vpow2.f32 %v3954_v22 }
0x3ad6   : > { %v4874_v48 = vpop.eup %4873 }
0x3ad7   : > { %v3220_v50 = vadd.f32 1.0, %v4874_v48 }
0x3ad9   : > { %4875 = vrcp.f32 %v3220_v50 }
0x3ae3   : > { %v4876_v28 = vpop.eup %4875 }
0x3ae4   : > { %v3223_v19 = vmul.f32 2.0, %v4876_v28  ;;  %v3228_v60 = vmul.f32 %v4876_v28, %v3226_v58 }
0x3ae6   : > { %v3955_v54 = vadd.f32 -1.0, %v3223_v19 }
0x3ae8   : > { %3230 = vrot.lane.b32.xlu0 %v3955_v54, %s4909_s21 }
0x3b5a   : > { %v3231_v51 = vpop.permute.xlu0 %3230 }
0x3b5b   : > { %v3233_v53 = vmul.f32 %v4876_v28, %v3231_v51 }
0x3b5d   : > { %3235 = vrot.lane.b32.xlu1 %v3233_v53, %s4910_s22 }
0x3bcf   : > { %v3236_v21 = vpop.permute.xlu1 %3235 }
0x3bd0   : > { %v3238_v15 = vadd.f32 %v3236_v21, %v3228_v60 }
0x3bd2   : > { %4877 = vtanh.f32 %v3238_v15 }
0x3bdc   : > { %v4878_v37 = vpop.eup %4877 }
0x3bdd   : > { %3241 = vrot.lane.b32.xlu0 %v4878_v37, %s4909_s21 }
0x3c4f   : > { %v3242_v62 = vpop.permute.xlu0 %3241 }
0x3c50   : > { %v5530_v63 = vmul.f32 %v4876_v28, %v3242_v62  ;;  %v3564_v62 = vsel %vm1421_vm3, %v5471_v30, %v5485_v52  ;;  %v3570_v30 = vld [vmem:[%s5627_s5 + $0x50] sm:$0xff]  ;;  %v3571_v52 = vld [vmem:[%s5627_s5 + $0x58] sm:$0xff] }
0x3c52   : > { %3246 = vrot.lane.b32.xlu1 %v5530_v63, %s4910_s22 }
0x3cc4   : > { %v3247_v1 = vpop.permute.xlu1 %3246 }
0x3cc5   : > { %4481 = vmatmul.mubr.msk.f32.vlgmr.msra.gmra.mrb[32].mxu1 %vm481_vm2, %v3247_v1  ;;  %v3568_v1 = vld [vmem:[%s5627_s5 + $0x40] sm:$0xff] }
0x3cc6   : > { %4717 = vmatpush3.bf16.msra.mxu1 %v5420_v40  ;;  %4502 = vmatprep.mubr.msk.f32.mxu1 %vm4907_vm1, %v4908_v29 }
0x3cc7   : > { %4718 = vmatprep.subr.bf16.mxu1 %v4906_v11  ;;  %v3333_v11 = vrot.slane %v3238_v15, 4 }
0x3cca   : > { %4720 = vmatpush3.bf16.msra.mxu1 %v5433_v56 }
0x3d98   : > { %v3316_v2 = vpop.f32.mrb[32].mxu1 }
0x3d99   : > { %v3321_v36 = vrot.slane %v3316_v2, 4  ;;  %v4482_v4 = vpop.f32.mrb[33].mxu1  ;;  %v3569_v2 = vld [vmem:[%s5627_s5 + $0x48] sm:$0xff] }
0x3d9b   : > { %v3323_v5 = vadd.f32 %v3321_v36, %v2717_v41  ;;  %v4721_v36 = vpack.c.bf16 %v3569_v2, %v3568_v1 }
0x3d9d   : > { %v3957_v43 = vmul.f32 -1.442695, %v3323_v5  ;;  %4722 = vmatprep.subr.bf16.mxu0 %v4721_v36 }
0x3d9f   : > { %4879 = vpow2.f32 %v3957_v43 }
0x3da9   : > { %v4880_v44 = vpop.eup %4879 }
0x3daa   : > { %v3327_v8 = vadd.f32 1.0, %v4880_v44  ;;  %v4725_v44 = vpack.c.bf16 %v3571_v52, %v3570_v30 }
0x3dac   : > { %4881 = vrcp.f32 %v3327_v8 }
0x3db6   : > { %v4882_v45 = vpop.eup %4881 }
0x3db7   : > { %v3330_v3 = vmul.f32 2.0, %v4882_v45  ;;  %v3335_v56 = vmul.f32 %v4882_v45, %v3333_v11 }
0x3db9   : > { %v3958_v38 = vadd.f32 -1.0, %v3330_v3 }
0x3dbb   : > { %3337 = vrot.lane.b32.xlu0 %v3958_v38, %s4909_s21  ;;  %v3565_v38 = vsel %vm1421_vm3, %v5501_v9, %v5515_v49 }
0x3e2d   : > { %v3338_v40 = vpop.permute.xlu0 %3337 }
0x3e2e   : > { %v3340_v29 = vmul.f32 %v4882_v45, %v3338_v40  ;;  %v3686_v40 = vld [vmem:[%s5629_s7] sm:$0xff] }
0x3e30   : > { %3342 = vrot.lane.b32.xlu1 %v3340_v29, %s4910_s22  ;;  %v3687_v29 = vld [vmem:[%s5629_s7 + $0x8] sm:$0xff] }
0x3e31   : > { %v4729_v11 = vpack.c.bf16 %v3687_v29, %v3686_v40 }
0x3e33   : > { %4730 = vmatprep.subr.bf16.mxu1 %v4729_v11 }
0x3ea2   : > { %v3343_v10 = vpop.permute.xlu1 %3342 }
0x3ea3   : > { %v3345_v13 = vadd.f32 %v3343_v10, %v3335_v56 }
0x3ea5   : > { %4883 = vtanh.f32 %v3345_v13  ;;  %v3438_v39 = vrot.slane %v3345_v13, 4 }
0x3eaf   : > { %v4884_v17 = vpop.eup %4883 }
0x3eb0   : > { %3348 = vrot.lane.b32.xlu0 %v4884_v17, %s4909_s21  ;;  %v3688_v17 = vld [vmem:[%s5629_s7 + $0x10] sm:$0xff] }
0x3f22   : > { %v3349_v31 = vpop.permute.xlu0 %3348 }
0x3f23   : > { %v3351_v55 = vmul.f32 %v4882_v45, %v3349_v31  ;;  %v3689_v31 = vld [vmem:[%s5629_s7 + $0x18] sm:$0xff] }
0x3f25   : > { %v3353_v23 = vrot.slane %v3351_v55, 4  ;;  %v3566_v4 = vsel %vm1421_vm3, %v5530_v63, %v3351_v55  ;;  %v4733_v55 = vpack.c.bf16 %v3689_v31, %v3688_v17 }
0x3f27   : > { %3354 = vrot.lane.b32.xlu1 %v3353_v23, %s4910_s22 }
0x3f99   : > { %v3355_v24 = vpop.permute.xlu1 %3354 }
0x3f9a   : > { %4492 = vmatmul.mubr.msk.f32.vlgmr.msra.gmra.mrb[34].mxu0 %vm481_vm2, %v3355_v24  ;;  %v3965_v24 = vld [vmem:[%s5628_s6 + $0x2] ss:$0 sm:$0xff] }
0x3f9b   : > { %4724 = vmatpush3.bf16.msra.mxu0 %v4721_v36 }
0x3f9c   : > { %4726 = vmatprep.subr.bf16.mxu0 %v4725_v44 }
0x3f9f   : > { %4728 = vmatpush3.bf16.msra.mxu0 %v4725_v44 }
0x406d   : > { %v3424_v27 = vpop.f32.mrb[34].mxu0 }
0x406e   : > { %v3428_v59 = vadd.f32 %v3424_v27, %v2722_v25  ;;  %v4493_v0 = vpop.f32.mrb[35].mxu0 }
0x4070   : > { %v3960_v26 = vmul.f32 -1.442695, %v3428_v59 }
0x4072   : > { %4885 = vpow2.f32 %v3960_v26 }
0x407c   : > { %v4886_v32 = vpop.eup %4885 }
0x407d   : > { %v3432_v57 = vadd.f32 1.0, %v4886_v32 }
0x407f   : > { %4887 = vrcp.f32 %v3432_v57 }
0x4089   : > { %v4888_v33 = vpop.eup %4887 }
0x408a   : > { %v3435_v34 = vmul.f32 2.0, %v4888_v33  ;;  %v3440_v41 = vmul.f32 %v4888_v33, %v3438_v39  ;;  %v3970_v39 = vld [vmem:[%s5630_s8] ss:$0 sm:$0xff] }
0x408c   : > { %v3961_v6 = vadd.f32 -1.0, %v3435_v34 }
0x408e   : > { %3442 = vrot.lane.b32.xlu0 %v3961_v6, %s4909_s21 }
0x4100   : > { %v3443_v35 = vpop.permute.xlu0 %3442 }
0x4101   : > { %v3445_v7 = vmul.f32 %v4888_v33, %v3443_v35 }
0x4103   : > { %3447 = vrot.lane.b32.xlu1 %v3445_v7, %s4910_s22 }
0x4175   : > { %v3448_v61 = vpop.permute.xlu1 %3447 }
0x4176   : > { %v3450_v20 = vadd.f32 %v3448_v61, %v3440_v41 }
0x4178   : > { %4889 = vtanh.f32 %v3450_v20  ;;  %v3545_v5 = vrot.slane %v3450_v20, 4 }
0x4182   : > { %v4890_v42 = vpop.eup %4889 }
0x4183   : > { %3453 = vrot.lane.b32.xlu0 %v4890_v42, %s4909_s21 }
0x41f5   : > { %v3454_v46 = vpop.permute.xlu0 %3453 }
0x41f6   : > { %v3456_v47 = vmul.f32 %v4888_v33, %v3454_v46 }
0x41f8   : > { %3458 = vrot.lane.b32.xlu1 %v3456_v47, %s4910_s22 }
0x426a   : > { %v3459_v22 = vpop.permute.xlu1 %3458 }
0x426b   : > { %4503 = vmatmul.mubr.msk.f32.vlgmr.msra.gmra.mrb[34].mxu1 %vm481_vm2, %v3459_v22 }
0x426c   : > { %4732 = vmatpush3.bf16.msra.mxu1 %v4729_v11 }
0x426d   : > { %4734 = vmatprep.subr.bf16.mxu1 %v4733_v55 }
0x4270   : > { %4736 = vmatpush3.bf16.msra.mxu1 %v4733_v55 }
0x433e   : > { %v3528_v48 = vpop.f32.mrb[34].mxu1 }
0x433f   : > { %v3533_v50 = vrot.slane %v3528_v48, 4  ;;  %v4504_v28 = vpop.f32.mrb[35].mxu1 }
0x4341   : > { %v3535_v19 = vadd.f32 %v3533_v50, %v2722_v25 }
0x4343   : > { %v3963_v54 = vmul.f32 -1.442695, %v3535_v19 }
0x4345   : > { %4891 = vpow2.f32 %v3963_v54 }
0x434f   : > { %v4892_v51 = vpop.eup %4891 }
0x4350   : > { %v3539_v53 = vadd.f32 1.0, %v4892_v51 }
0x4352   : > { %4893 = vrcp.f32 %v3539_v53 }
0x435c   : > { %v4894_v58 = vpop.eup %4893 }
0x435d   : > { %v3542_v60 = vmul.f32 2.0, %v4894_v58  ;;  %v3547_v43 = vmul.f32 %v4894_v58, %v3545_v5 }
0x435f   : > { %v3964_v21 = vadd.f32 -1.0, %v3542_v60 }
0x4361   : > { %3549 = vrot.lane.b32.xlu0 %v3964_v21, %s4909_s21 }
0x43d3   : > { %v3550_v15 = vpop.permute.xlu0 %3549 }
0x43d4   : > { %v3552_v37 = vmul.f32 %v4894_v58, %v3550_v15 }
0x43d6   : > { %3554 = vrot.lane.b32.xlu1 %v3552_v37, %s4910_s22 }
0x43da   : > { %3581 = vrot.lane.b32.xlu1 %v3564_v62, %s4910_s22 }
0x43de   : > { %3585 = vrot.lane.b32.xlu1 %v3566_v4, %s4910_s22 }
0x4448   : > { %v3555_v8 = vpop.permute.xlu1 %3554 }
0x4449   : > { %v3557_v45 = vadd.f32 %v3555_v8, %v3547_v43 }
0x444b   : > { %4895 = vtanh.f32 %v3557_v45 }
0x444c   : > { %v3582_v63 = vpop.permute.xlu1 %3581 }
0x444d   : > { %4513 = vmatprep.mubr.msk.f32.mxu0 %vm481_vm2, %v3582_v63 }
0x4450   : > { %v3586_v49 = vpop.permute.xlu1 %3585 }
0x4455   : > { %v4896_v3 = vpop.eup %4895 }
0x4456   : > { %3560 = vrot.lane.b32.xlu0 %v4896_v3, %s4909_s21 }
0x445a   : > { %3583 = vrot.lane.b32.xlu0 %v3565_v38, %s4910_s22 }
0x44c8   : > { %v3561_v56 = vpop.permute.xlu0 %3560 }
0x44c9   : > { %v3563_v10 = vmul.f32 %v4894_v58, %v3561_v56 }
0x44cb   : > { %v3567_v13 = vsel %vm1421_vm3, %v3456_v47, %v3563_v10 }
0x44cc   : > { %3587 = vrot.lane.b32.xlu0 %v3567_v13, %s4910_s22  ;;  %v3584_v9 = vpop.permute.xlu0 %3583 }
0x44cd   : > { %4514 = vmatmul.mubr.msk.f32.vlgmr.msra.gmra.mrb[36].mxu0 %vm481_vm2, %v3584_v9 }
0x44ce   : > { %4516 = vmatprep.mubr.msk.f32.mxu0 %vm481_vm2, %v3586_v49 }
0x453e   : > { %v3588_v23 = vpop.permute.xlu0 %3587 }
0x453f   : > { %4517 = vmatmul.mubr.msk.f32.gmra.mrb[38].mxu0 %vm481_vm2, %v3588_v23 }
0x45a0   : > { %v4515_v25 = vpop.f32.mrb[36].mxu0 }
0x45a1   : > { %v3669_v27 = vadd.f32 %v4515_v25, %v3965_v24  ;;  %v3663_v59 = vpop.f32.mrb[37].mxu0 }
0x45a2   : > { %v3664_v0 = vadd.f32 %v3965_v24, %v3663_v59 }
0x45a3   : > { %v3683_v32 = vmax.f32 %v3669_v27, 0.0 }
0x45a4   : > { %v3682_v26 = vmax.f32 %v3664_v0, 0.0 }
0x45a6   : > { %4527 = vmatprep.mubr.msk.f32.mxu1 %vm481_vm2, %v3682_v26 }
0x45a7   : > { %4528 = vmatmul.mubr.msk.f32.vlgmr.msra.gmra.mrb[36].mxu1 %vm481_vm2, %v3683_v32 }
0x4612   : > { %v4518_v57 = vpop.f32.mrb[38].mxu0 }
0x4613   : > { %v3679_v33 = vadd.f32 %v4518_v57, %v3965_v24  ;;  %v3673_v34 = vpop.f32.mrb[39].mxu0 }
0x4614   : > { %v3674_v6 = vadd.f32 %v3965_v24, %v3673_v34 }
0x4615   : > { %v3685_v7 = vmax.f32 %v3679_v33, 0.0 }
0x4616   : > { %v3684_v35 = vmax.f32 %v3674_v6, 0.0 }
0x4618   : > { %4530 = vmatprep.mubr.msk.f32.mxu1 %vm481_vm2, %v3684_v35 }
0x4619   : > { %4531 = vmatmul.mubr.msk.f32.gmra.mrb[38].mxu1 %vm481_vm2, %v3685_v7 }
0x467a   : > { %v4529_v41 = vpop.f32.mrb[36].mxu1 }
0x467b   : > { %v3781_v61 = vadd.f32 %v4529_v41, %v3970_v39  ;;  %v3775_v20 = vpop.f32.mrb[37].mxu1 }
0x467c   : > { %v3776_v42 = vadd.f32 %v3970_v39, %v3775_v20 }
0x467d   : > { %v3795_v46 = vadd.f32 %v3781_v61, %v4994_v14 }
0x467e   : > { %v3794_v47 = vadd.f32 %v3776_v42, %v4990_v12 }
0x467f   : > { %3799 = vst.msk [vmem:[%s332_s17 + $0x8] sm:$0xff] %vm370_vm0, %v3795_v46 }
0x4680   : > { %3798 = vst.msk [vmem:[%s332_s17] sm:$0xff] %vm370_vm0, %v3794_v47 }
0x46ec   : > { %v4532_v22 = vpop.f32.mrb[38].mxu1 }
0x46ed   : > { %v3791_v48 = vadd.f32 %v4532_v22, %v3970_v39  ;;  %v3785_v50 = vpop.f32.mrb[39].mxu1 }
0x46ee   : > { %v3786_v28 = vadd.f32 %v3970_v39, %v3785_v50 }
0x46ef   : > { %v3797_v19 = vadd.f32 %v3791_v48, %v5002_v18 }
0x46f0   : > { %v3796_v54 = vadd.f32 %v3786_v28, %v4998_v16 }
0x46f1   : > { %3801 = vst.msk [vmem:[%s332_s17 + $0x18] sm:$0xff] %vm370_vm0, %v3797_v19 }
0x46f2   : > { %3800 = vst.msk [vmem:[%s332_s17 + $0x10] sm:$0xff] %vm370_vm0, %v3796_v54 }
0x46f3 PF: > { %s19_s30 = sadd.s32 1, %s4903_s30  }
0x46f4   : > { %p16_p4 = scmp.ge.s32.totalorder %s19_s30, 4  }
0x46f6   :  { %18 = sbr.rel (!%p16_p4) target bundleno = 1 (0x1), region = 86 }

</bundles_post_ra>
